<compile_context>
chip_gen: v7x
topology: tpu7x:2x2x1
jax: 0.10.0
libtpu: 0.0.40
codegen_flags: <defaults>
</compile_context>

<pallas_src>
import math
from functools import partial

import jax
import jax.numpy as jnp
from jax.experimental import pallas as pl
from jax.experimental.pallas import tpu as pltpu


# ----------------------------------------------------------------------------
# fused kernel: expand (Linear, no bias) + grouped LayerNorm + pixel shuffle
# ----------------------------------------------------------------------------
def _expand_shuffle_ln_kernel(x_ref, w_ref, s_ref, st_ref, gamma_ref, beta_ref,
                              o_ref, *, eps, inv_c):
    # x_ref:     (tr*W, C)          rows = (input_row, w) flattened, C = dim
    # w_ref:     (C, K)   bf16      K = dim_scale*dim, columns ordered (p1, p2, c)
    # s_ref:     (K, G)   bf16      segment-sum matrix, G = dim_scale**2 groups
    # st_ref:    (G, K)   bf16      its transpose (group -> column broadcast)
    # gamma_ref: (1, K)   f32       LayerNorm gamma tiled over the p1*p2 groups
    # beta_ref:  (1, K)   f32       LayerNorm beta  tiled over the p1*p2 groups
    # o_ref:     (tr, p1, W, p2*c)  row-major identical to (B, H*p1, W*p2, c)
    tr, ds, W, dsc = o_ref.shape

    # 1) channel expansion on the MXU: bf16 inputs, f32 accumulation.
    y = jnp.dot(x_ref[...].astype(jnp.bfloat16), w_ref[...],
                preferred_element_type=jnp.float32)                  # (tr*W, K)

    # 2) LayerNorm over each length-c channel group.
    #    Group means/variances via narrow (K -> G) segment-sum matmuls and
    #    (G -> K) broadcast matmuls — all bf16 on the MXU, f32 accumulate.
    s = s_ref[...]                                                   # (K, G)
    st = st_ref[...]                                                 # (G, K)
    mu_g = jnp.dot(y.astype(jnp.bfloat16), s,
                   preferred_element_type=jnp.float32) * inv_c       # (tr*W, G)
    mu = jnp.dot(mu_g.astype(jnp.bfloat16), st,
                 preferred_element_type=jnp.float32)                 # (tr*W, K)
    yc = y - mu
    var_g = jnp.dot((yc * yc).astype(jnp.bfloat16), s,
                    preferred_element_type=jnp.float32) * inv_c      # (tr*W, G)
    rstd_g = jax.lax.rsqrt(var_g + eps)
    rstd = jnp.dot(rstd_g.astype(jnp.bfloat16), st,
                   preferred_element_type=jnp.float32)               # (tr*W, K)
    yn = yc * rstd * gamma_ref[...] + beta_ref[...]

    # 3) pixel shuffle absorbed into the output layout: column slab p1 == i is a
    #    contiguous (tr, W, p2*c) sub-block of the output; reshape only splits
    #    the sublane dim (lane dim untouched) so it lowers trivially.
    for i in range(ds):
        o_ref[:, i, :, :] = (
            yn[:, i * dsc:(i + 1) * dsc].reshape(tr, W, dsc).astype(o_ref.dtype))


def _choose_row_tile(BH, W, target_rows=2048, min_grid=4):
    """Largest divisor tr of BH with tr*W <= target, tr*W % 8 == 0 (or full),
    preferring a grid of >= min_grid steps so the pipeline / megacore stay busy."""
    cands = [tr for tr in range(1, BH + 1)
             if BH % tr == 0 and ((tr * W) % 8 == 0 or tr == BH)]
    if not cands:
        return BH
    cap = max(target_rows, W)
    in_cap = [tr for tr in cands if tr * W <= cap] or [min(cands)]
    pipelined = [tr for tr in in_cap if BH // tr >= min_grid]
    return max(pipelined) if pipelined else max(in_cap)


def final_patch_expand2d(x, w_expand, gamma, beta, *, dim_scale=4, eps=1e-5,
                         row_tile_target=2048, out_dtype=None):
    B, H, W, C = x.shape
    ds = dim_scale
    K = ds * C                      # expanded channel width (p1*p2*c)
    c = C // ds                     # channels after rearrange / LayerNorm width
    G = ds * ds                     # number of (p1, p2) LayerNorm groups per pixel
    assert C % ds == 0 and w_expand.shape == (C, K)
    assert gamma.shape == (c,) and beta.shape == (c,)
    out_dtype = x.dtype if out_dtype is None else out_dtype

    BH = B * H
    tr = _choose_row_tile(BH, W, row_tile_target)
    grid_len = BH // tr

    # narrow segment-sum / broadcast matrices for the per-(p1,p2) groups
    gid = jnp.arange(K, dtype=jnp.int32) // c                        # column -> group
    S = (gid[:, None] == jnp.arange(G, dtype=jnp.int32)[None, :]).astype(jnp.bfloat16)
    St = (jnp.arange(G, dtype=jnp.int32)[:, None] == gid[None, :]).astype(jnp.bfloat16)
    gamma_t = jnp.tile(gamma.astype(jnp.float32), G).reshape(1, K)
    beta_t = jnp.tile(beta.astype(jnp.float32), G).reshape(1, K)
    w_bf16 = w_expand.astype(jnp.bfloat16)

    x2 = x.reshape(BH * W, C)       # free reshape (row-major identical)

    # VMEM budget / scheduling hints
    in_bytes = x2.dtype.itemsize
    out_bytes = jnp.dtype(out_dtype).itemsize
    est_vmem = (2 * tr * W * C * in_bytes          # x block, double-buffered
                + 2 * tr * W * K * out_bytes       # out block, double-buffered
                + 6 * tr * W * K * 4               # live f32 intermediates
                + 2 * (C * K * 2 + 2 * K * G * 2 + 2 * K * 4))
    vmem_limit = int(min(48 * 1024 * 1024, max(32 * 1024 * 1024, int(1.5 * est_vmem))))

    n_rows = BH * W
    flops = int(2 * n_rows * (C * K + 2 * K * G + 2 * G * K) + 8 * n_rows * K)
    bytes_accessed = int(n_rows * C * in_bytes + n_rows * K * out_bytes
                         + C * K * 2 + 2 * K * G * 2 + 2 * K * 4)

    out4 = pl.pallas_call(
        partial(_expand_shuffle_ln_kernel, eps=eps, inv_c=1.0 / c),
        out_shape=jax.ShapeDtypeStruct((BH, ds, W, ds * c), out_dtype),
        grid=(grid_len,),
        in_specs=[
            pl.BlockSpec((tr * W, C), lambda r: (r, 0)),
            pl.BlockSpec((C, K), lambda r: (0, 0)),
            pl.BlockSpec((K, G), lambda r: (0, 0)),
            pl.BlockSpec((G, K), lambda r: (0, 0)),
            pl.BlockSpec((1, K), lambda r: (0, 0)),
            pl.BlockSpec((1, K), lambda r: (0, 0)),
        ],
        out_specs=pl.BlockSpec((tr, ds, W, ds * c), lambda r: (r, 0, 0, 0)),
        compiler_params=pltpu.CompilerParams(
            dimension_semantics=("parallel",),
            vmem_limit_bytes=vmem_limit),
        cost_estimate=pl.CostEstimate(flops=flops,
                                      transcendentals=int(n_rows * G),
                                      bytes_accessed=bytes_accessed),
    )(x2, w_bf16, S, St, gamma_t, beta_t)

    # (BH, p1, W, p2*c) -> (B, H*p1, W*p2, c): row-major identical, free reshape
    return out4.reshape(B, H * ds, W * ds, c)


# ----------------------------------------------------------------------------
# pure-JAX reference (numerical sanity check)
# ----------------------------------------------------------------------------
def final_patch_expand2d_ref(x, w_expand, gamma, beta, *, dim_scale=4, eps=1e-5):
    B, H, W, C = x.shape
    ds = dim_scale
    c = C // ds
    y = jnp.einsum('bhwc,ck->bhwk', x, w_expand,
                   precision=jax.lax.Precision.HIGHEST)
    y = y.reshape(B, H, W, ds, ds, c)
    y = jnp.transpose(y, (0, 1, 3, 2, 4, 5)).reshape(B, H * ds, W * ds, c)
    mu = jnp.mean(y, axis=-1, keepdims=True)
    var = jnp.mean((y - mu) ** 2, axis=-1, keepdims=True)
    return (y - mu) * jax.lax.rsqrt(var + eps) * gamma + beta


# ----------------------------------------------------------------------------
if __name__ == "__main__":
    B, H, W = 2, 16, 16
    dim, dim_scale = 64, 4

    key = jax.random.PRNGKey(0)
    kx, kw, kg, kb = jax.random.split(key, 4)
    x = jax.random.normal(kx, (B, H, W, dim), jnp.float32)
    bound = 1.0 / math.sqrt(dim)                 # nn.Linear default init bound
    w_expand = jax.random.uniform(kw, (dim, dim_scale * dim), jnp.float32,
                                  -bound, bound)
    gamma = 1.0 + 0.1 * jax.random.normal(kg, (dim // dim_scale,), jnp.float32)
    beta = 0.1 * jax.random.normal(kb, (dim // dim_scale,), jnp.float32)

    fwd = jax.jit(partial(final_patch_expand2d, dim_scale=dim_scale))
    out = jax.block_until_ready(fwd(x, w_expand, gamma, beta))

    ref = jax.block_until_ready(
        final_patch_expand2d_ref(x, w_expand, gamma, beta, dim_scale=dim_scale))

    assert out.shape == (B, H * dim_scale, W * dim_scale, dim // dim_scale)
    err = float(jnp.max(jnp.abs(out - ref)))
    # tolerance covers bf16 MXU inputs with f32 accumulation (reference is f32 HIGHEST)
    tol = 3e-2 * (1.0 + float(jnp.max(jnp.abs(ref))))
    assert err < tol, f"max abs err {err} exceeds tol {tol}"
    print("KERNEL_OK")
</pallas_src>

<mosaic_0001>
module attributes {stable_mosaic.version = 11 : i64} {
  func.func @_expand_shuffle_ln_kernel(%arg0: i32, %arg1: memref<128x64xf32, #tpu.memory_space<vmem>>, %arg2: memref<64x256xbf16, #tpu.memory_space<vmem>>, %arg3: memref<256x16xbf16, #tpu.memory_space<vmem>>, %arg4: memref<16x256xbf16, #tpu.memory_space<vmem>>, %arg5: memref<1x256xf32, #tpu.memory_space<vmem>>, %arg6: memref<1x256xf32, #tpu.memory_space<vmem>>, %arg7: memref<8x4x16x64xf32, #tpu.memory_space<vmem>>) attributes {dimension_semantics = [#tpu.dimension_semantics<parallel>], iteration_bounds = array<i64: 4>, scalar_prefetch = 0 : i64, scratch_operands = 0 : i64, tpu.core_type = #tpu.core_type<tc>, window_params = [{transform_indices = @transform_0, window_bounds = array<i64: 128, 64>}, {pipeline_mode = #tpu.pipeline_mode<synchronous>, transform_indices = @transform_1, window_bounds = array<i64: 64, 256>}, {pipeline_mode = #tpu.pipeline_mode<synchronous>, transform_indices = @transform_2, window_bounds = array<i64: 256, 16>}, {pipeline_mode = #tpu.pipeline_mode<synchronous>, transform_indices = @transform_3, window_bounds = array<i64: 16, 256>}, {pipeline_mode = #tpu.pipeline_mode<synchronous>, transform_indices = @transform_4, window_bounds = array<i64: 1, 256>}, {pipeline_mode = #tpu.pipeline_mode<synchronous>, transform_indices = @transform_5, window_bounds = array<i64: 1, 256>}, {transform_indices = @transform_6, window_bounds = array<i64: 8, 4, 16, 64>}]} {
    %c0 = arith.constant 0 : index
    %c0_0 = arith.constant 0 : index
    %0 = vector.load %arg1[%c0, %c0_0] : memref<128x64xf32, #tpu.memory_space<vmem>>, vector<128x64xf32>
    %1 = arith.truncf %0 : vector<128x64xf32> to vector<128x64xbf16>
    %c0_1 = arith.constant 0 : index
    %c0_2 = arith.constant 0 : index
    %2 = vector.load %arg2[%c0_1, %c0_2] : memref<64x256xbf16, #tpu.memory_space<vmem>>, vector<64x256xbf16>
    %cst = arith.constant dense<0.000000e+00> : vector<128x256xf32>
    %3 = tpu.matmul %1, %2, %cst {dimension_numbers = #tpu.dot_dimension_numbers<[1], [0], [0], [1], [0, 0, 1, 1], [], []>} : vector<128x64xbf16>, vector<64x256xbf16>, vector<128x256xf32> -> vector<128x256xf32>
    %c0_3 = arith.constant 0 : index
    %c0_4 = arith.constant 0 : index
    %4 = vector.load %arg3[%c0_3, %c0_4] : memref<256x16xbf16, #tpu.memory_space<vmem>>, vector<256x16xbf16>
    %c0_5 = arith.constant 0 : index
    %c0_6 = arith.constant 0 : index
    %5 = vector.load %arg4[%c0_5, %c0_6] : memref<16x256xbf16, #tpu.memory_space<vmem>>, vector<16x256xbf16>
    %6 = arith.truncf %3 : vector<128x256xf32> to vector<128x256xbf16>
    %cst_7 = arith.constant dense<0.000000e+00> : vector<128x16xf32>
    %7 = tpu.matmul %6, %4, %cst_7 {dimension_numbers = #tpu.dot_dimension_numbers<[1], [0], [0], [1], [0, 0, 1, 1], [], []>} : vector<128x256xbf16>, vector<256x16xbf16>, vector<128x16xf32> -> vector<128x16xf32>
    %cst_8 = arith.constant 6.250000e-02 : f32
    %8 = vector.broadcast %cst_8 : f32 to vector<128x16xf32>
    %9 = arith.mulf %7, %8 : vector<128x16xf32>
    %10 = arith.truncf %9 : vector<128x16xf32> to vector<128x16xbf16>
    %cst_9 = arith.constant dense<0.000000e+00> : vector<128x256xf32>
    %11 = tpu.matmul %10, %5, %cst_9 {dimension_numbers = #tpu.dot_dimension_numbers<[1], [0], [0], [1], [0, 0, 1, 1], [], []>} : vector<128x16xbf16>, vector<16x256xbf16>, vector<128x256xf32> -> vector<128x256xf32>
    %12 = arith.subf %3, %11 : vector<128x256xf32>
    %13 = arith.mulf %12, %12 : vector<128x256xf32>
    %14 = arith.truncf %13 : vector<128x256xf32> to vector<128x256xbf16>
    %cst_10 = arith.constant dense<0.000000e+00> : vector<128x16xf32>
    %15 = tpu.matmul %14, %4, %cst_10 {dimension_numbers = #tpu.dot_dimension_numbers<[1], [0], [0], [1], [0, 0, 1, 1], [], []>} : vector<128x256xbf16>, vector<256x16xbf16>, vector<128x16xf32> -> vector<128x16xf32>
    %cst_11 = arith.constant 6.250000e-02 : f32
    %16 = vector.broadcast %cst_11 : f32 to vector<128x16xf32>
    %17 = arith.mulf %15, %16 : vector<128x16xf32>
    %cst_12 = arith.constant 9.99999974E-6 : f32
    %18 = vector.broadcast %cst_12 : f32 to vector<128x16xf32>
    %19 = arith.addf %17, %18 : vector<128x16xf32>
    %20 = math.rsqrt %19 : vector<128x16xf32>
    %21 = arith.truncf %20 : vector<128x16xf32> to vector<128x16xbf16>
    %cst_13 = arith.constant dense<0.000000e+00> : vector<128x256xf32>
    %22 = tpu.matmul %21, %5, %cst_13 {dimension_numbers = #tpu.dot_dimension_numbers<[1], [0], [0], [1], [0, 0, 1, 1], [], []>} : vector<128x16xbf16>, vector<16x256xbf16>, vector<128x256xf32> -> vector<128x256xf32>
    %23 = arith.mulf %12, %22 : vector<128x256xf32>
    %c0_14 = arith.constant 0 : index
    %c0_15 = arith.constant 0 : index
    %24 = vector.load %arg5[%c0_14, %c0_15] : memref<1x256xf32, #tpu.memory_space<vmem>>, vector<1x256xf32>
    %25 = vector.broadcast %24 : vector<1x256xf32> to vector<128x256xf32>
    %26 = arith.mulf %23, %25 : vector<128x256xf32>
    %c0_16 = arith.constant 0 : index
    %c0_17 = arith.constant 0 : index
    %27 = vector.load %arg6[%c0_16, %c0_17] : memref<1x256xf32, #tpu.memory_space<vmem>>, vector<1x256xf32>
    %28 = vector.broadcast %27 : vector<1x256xf32> to vector<128x256xf32>
    %29 = arith.addf %26, %28 : vector<128x256xf32>
    %30 = vector.extract_strided_slice %29 {offsets = [0, 0], sizes = [128, 64], strides = [1, 1]} : vector<128x256xf32> to vector<128x64xf32>
    %31 = vector.shape_cast %30 : vector<128x64xf32> to vector<8x16x64xf32>
    %c0_18 = arith.constant 0 : index
    %c0_19 = arith.constant 0 : index
    %c0_20 = arith.constant 0 : index
    %c0_21 = arith.constant 0 : index
    %32 = vector.load %arg7[%c0_18, %c0_19, %c0_20, %c0_21] : memref<8x4x16x64xf32, #tpu.memory_space<vmem>>, vector<8x1x16x64xf32>
    %33 = vector.shape_cast %32 : vector<8x1x16x64xf32> to vector<8x16x64xf32>
    %34 = vector.shape_cast %31 : vector<8x16x64xf32> to vector<8x1x16x64xf32>
    tpu.vector_store %arg7[%c0_18, %c0_19, %c0_20, %c0_21], %34 {strides = array<i32>} : memref<8x4x16x64xf32, #tpu.memory_space<vmem>>, vector<8x1x16x64xf32>,
    %35 = vector.extract_strided_slice %29 {offsets = [0, 64], sizes = [128, 64], strides = [1, 1]} : vector<128x256xf32> to vector<128x64xf32>
    %36 = vector.shape_cast %35 : vector<128x64xf32> to vector<8x16x64xf32>
    %c0_22 = arith.constant 0 : index
    %c1 = arith.constant 1 : index
    %c0_23 = arith.constant 0 : index
    %c0_24 = arith.constant 0 : index
    %37 = vector.load %arg7[%c0_22, %c1, %c0_23, %c0_24] : memref<8x4x16x64xf32, #tpu.memory_space<vmem>>, vector<8x1x16x64xf32>
    %38 = vector.shape_cast %37 : vector<8x1x16x64xf32> to vector<8x16x64xf32>
    %39 = vector.shape_cast %36 : vector<8x16x64xf32> to vector<8x1x16x64xf32>
    tpu.vector_store %arg7[%c0_22, %c1, %c0_23, %c0_24], %39 {strides = array<i32>} : memref<8x4x16x64xf32, #tpu.memory_space<vmem>>, vector<8x1x16x64xf32>,
    %40 = vector.extract_strided_slice %29 {offsets = [0, 128], sizes = [128, 64], strides = [1, 1]} : vector<128x256xf32> to vector<128x64xf32>
    %41 = vector.shape_cast %40 : vector<128x64xf32> to vector<8x16x64xf32>
    %c0_25 = arith.constant 0 : index
    %c2 = arith.constant 2 : index
    %c0_26 = arith.constant 0 : index
    %c0_27 = arith.constant 0 : index
    %42 = vector.load %arg7[%c0_25, %c2, %c0_26, %c0_27] : memref<8x4x16x64xf32, #tpu.memory_space<vmem>>, vector<8x1x16x64xf32>
    %43 = vector.shape_cast %42 : vector<8x1x16x64xf32> to vector<8x16x64xf32>
    %44 = vector.shape_cast %41 : vector<8x16x64xf32> to vector<8x1x16x64xf32>
    tpu.vector_store %arg7[%c0_25, %c2, %c0_26, %c0_27], %44 {strides = array<i32>} : memref<8x4x16x64xf32, #tpu.memory_space<vmem>>, vector<8x1x16x64xf32>,
    %45 = vector.extract_strided_slice %29 {offsets = [0, 192], sizes = [128, 64], strides = [1, 1]} : vector<128x256xf32> to vector<128x64xf32>
    %46 = vector.shape_cast %45 : vector<128x64xf32> to vector<8x16x64xf32>
    %c0_28 = arith.constant 0 : index
    %c3 = arith.constant 3 : index
    %c0_29 = arith.constant 0 : index
    %c0_30 = arith.constant 0 : index
    %47 = vector.load %arg7[%c0_28, %c3, %c0_29, %c0_30] : memref<8x4x16x64xf32, #tpu.memory_space<vmem>>, vector<8x1x16x64xf32>
    %48 = vector.shape_cast %47 : vector<8x1x16x64xf32> to vector<8x16x64xf32>
    %49 = vector.shape_cast %46 : vector<8x16x64xf32> to vector<8x1x16x64xf32>
    tpu.vector_store %arg7[%c0_28, %c3, %c0_29, %c0_30], %49 {strides = array<i32>} : memref<8x4x16x64xf32, #tpu.memory_space<vmem>>, vector<8x1x16x64xf32>,
    return
  }
  func.func @transform_0(%arg0: i32) -> (i32, i32) {
    %c0_i32 = arith.constant 0 : i32
    %c0_i32_0 = arith.constant 0 : i32
    return %arg0, %c0_i32 : i32, i32
  }
  func.func @transform_1(%arg0: i32) -> (i32, i32) {
    %c0_i32 = arith.constant 0 : i32
    %c0_i32_0 = arith.constant 0 : i32
    %c0_i32_1 = arith.constant 0 : i32
    return %c0_i32, %c0_i32_0 : i32, i32
  }
  func.func @transform_2(%arg0: i32) -> (i32, i32) {
    %c0_i32 = arith.constant 0 : i32
    %c0_i32_0 = arith.constant 0 : i32
    %c0_i32_1 = arith.constant 0 : i32
    return %c0_i32, %c0_i32_0 : i32, i32
  }
  func.func @transform_3(%arg0: i32) -> (i32, i32) {
    %c0_i32 = arith.constant 0 : i32
    %c0_i32_0 = arith.constant 0 : i32
    %c0_i32_1 = arith.constant 0 : i32
    return %c0_i32, %c0_i32_0 : i32, i32
  }
  func.func @transform_4(%arg0: i32) -> (i32, i32) {
    %c0_i32 = arith.constant 0 : i32
    %c0_i32_0 = arith.constant 0 : i32
    %c0_i32_1 = arith.constant 0 : i32
    return %c0_i32, %c0_i32_0 : i32, i32
  }
  func.func @transform_5(%arg0: i32) -> (i32, i32) {
    %c0_i32 = arith.constant 0 : i32
    %c0_i32_0 = arith.constant 0 : i32
    %c0_i32_1 = arith.constant 0 : i32
    return %c0_i32, %c0_i32_0 : i32, i32
  }
  func.func @transform_6(%arg0: i32) -> (i32, i32, i32, i32) {
    %c0_i32 = arith.constant 0 : i32
    %c0_i32_0 = arith.constant 0 : i32
    %c0_i32_1 = arith.constant 0 : i32
    %c0_i32_2 = arith.constant 0 : i32
    return %arg0, %c0_i32, %c0_i32_0, %c0_i32_1 : i32, i32, i32, i32
  }
}

</mosaic_0001>

<bundles_post_ra>
// kernel: tile.14
= control target key start
LH: loop header
LB: loop body
LE: loop exit
PB: predicated region body
PF: predicated region fallthrough
CT: control target
= control target key end

     0   :  { %s7_s6 = smov 3  ;;  %s21_s9 = smov 3  ;;  %vm4_vm0 = vcmask 130048   ;;  %vm11_vm1 = vcmask 1048448   ;;  %vm18_vm2 = vcmask 917248   ;;  %vm25_vm3 = vcmask 786048   ;;  %s128_s0 = inlined_call_operand.vmem [shape: f32[16,16], index: 0, kind: input, shape index: {}]   ;;  %s129_s1 = inlined_call_operand.vmem [shape: f32[1,256], index: 1, kind: output, shape index: {}]  }
   0x1   :  { %v66_v0 = vld [vmem:[%s128_s0 + $0x7] ss:$8 sm:%s7_s6]   ;;  %s81_s10 = smov 112   ;;  %v68_v1 = vld [vmem:[%s128_s0 + $0x5] ss:$8 sm:%s21_s9]   ;;  %s14_s13 = smov 3 }
   0x2   :  { %9 = vrot.lane.b32.xlu0 %v66_v0, %s81_s10  ;;  %s82_s14 = smov 80   ;;  %v67_v2 = vld [vmem:[%s128_s0 + $0x6] ss:$8 sm:%s14_s13]   ;;  %s28_s17 = smov 3  ;;  %vm32_vm4 = vcmask 654848   ;;  %vm39_vm5 = vcmask 523648  }
   0x3   :  { %23 = vrot.lane.b32.xlu1 %v68_v1, %s82_s14  ;;  %v69_v3 = vld [vmem:[%s128_s0 + $0x4] ss:$8 sm:%s28_s17]   ;;  %s35_s20 = smov 3  ;;  %s42_s21 = smov 3  ;;  %vm46_vm6 = vcmask 392448   ;;  %vm53_vm7 = vcmask 261248  }
   0x4   :  { %s83_s22 = smov 96   ;;  %s84_s23 = smov 64   ;;  %v70_v4 = vld [vmem:[%s128_s0 + $0x3] ss:$8 sm:%s35_s20]   ;;  %v71_v5 = vld [vmem:[%s128_s0 + $0x2] ss:$8 sm:%s42_s21]  }
   0x5   :  { %s2_s26 = smov 3  ;;  %s49_s29 = smov 3 }
   0x6   :  { %16 = vrot.lane.b32.xlu0 %v67_v2, %s83_s22  ;;  %v3_v6 = vld [vmem:[%s128_s0] ss:$8 sm:%s2_s26]   ;;  %s85_s3 = smov 48   ;;  %s86_s4 = smov 32  }
   0x7   :  { %30 = vrot.lane.b32.xlu1 %v69_v3, %s84_s23  ;;  %5 = vst.msk [vmem:[#allocation0] ss:$8 sm:$0x3] %vm4_vm0, %v3_v6   ;;  %v72_v7 = vld [vmem:[%s128_s0 + $0x1] ss:$8 sm:%s49_s29]   ;;  %s87_s0 = smov 16  }
   0xa   :  { %37 = vrot.lane.b32.xlu0 %v70_v4, %s85_s3 }
   0xb   :  { %44 = vrot.lane.b32.xlu1 %v71_v5, %s86_s4 }
   0xe   :  { %51 = vrot.lane.b32.xlu0 %v72_v7, %s87_s0 }
  0x74   :  { %v10_v8 = vpop.permute.xlu0 %9  }
  0x75   :  { %12 = vst.msk [vmem:[#allocation0] ss:$8 sm:$0x3] %vm11_vm1, %v10_v8   ;;  %v24_v9 = vpop.permute.xlu1 %23  }
  0x78   :  { %v17_v10 = vpop.permute.xlu0 %16  }
  0x79   :  { %19 = vst.msk [vmem:[#allocation0] ss:$8 sm:$0x3] %vm18_vm2, %v17_v10   ;;  %v31_v11 = vpop.permute.xlu1 %30  }
  0x7a   :  { %26 = vst.msk [vmem:[#allocation0] ss:$8 sm:$0x3] %vm25_vm3, %v24_v9  }
  0x7b   :  { %33 = vst.msk [vmem:[#allocation0] ss:$8 sm:$0x3] %vm32_vm4, %v31_v11  }
  0x7c   :  { %v38_v12 = vpop.permute.xlu0 %37  }
  0x7d   :  { %40 = vst.msk [vmem:[#allocation0] ss:$8 sm:$0x3] %vm39_vm5, %v38_v12   ;;  %v45_v13 = vpop.permute.xlu1 %44  }
  0x7e   :  { %47 = vst.msk [vmem:[#allocation0] ss:$8 sm:$0x3] %vm46_vm6, %v45_v13  }
  0x80   :  { %v52_v14 = vpop.permute.xlu0 %51  }
  0x81   :  { %54 = vst.msk [vmem:[#allocation0] ss:$8 sm:$0x3] %vm53_vm7, %v52_v14  }
  0x88   :  { %v58_v15 = vld [vmem:[#allocation0] sm:$0x1]  ;;  %v62_v16 = vld [vmem:[#allocation0 + $0x8] sm:$0x1] }
  0x89   :  { %60 = vst [vmem:[%s129_s1] sm:$0x1] %v58_v15  ;;  %73 = vst [vmem:[%s129_s1 + $0x1] sm:$0x1] %v62_v16 }

// kernel: tile.13
= control target key start
LH: loop header
LB: loop body
LE: loop exit
PB: predicated region body
PF: predicated region fallthrough
CT: control target
= control target key end

     0   :  { %2 = vsyncpa [#allocation1], 0  ;;  %s47_s6 = smov [#allocation0]   ;;  %s76_s0 = inlined_call_operand.hbm [shape: f32[16], index: 0, kind: input, shape index: {}]   ;;  %s77_s1 = inlined_call_operand.vmem [shape: f32[16,16], index: 1, kind: output, shape index: {}]  }
   0x1   :  { %s9_s7 = sshll.u32 %s47_s6, 4  ;;  %s23_s10 = scalar_lea.hbm %s76_s0, 16  ;;  %s10_s7 = int_to_ptr.vmem [resolvable:$true] %s9_s7 }
   0x2   :  { %p24_p0 = scmp.ne.s32.totalorder %s76_s0, %s23_s10  ;;  %p27_p1 = scmp.lt.u32.totalorder %s23_s10, %s76_s0 }
   0x4   :  { %p29_p2 = pnand %p27_p1, %p24_p0 }
   0x6   :  { %32 = shalt.err (!%p29_p2)
}
   0x7   :  { %s33_s15 = scalar_lea.vmem %s10_s7, 16  ;;  %s37_s16 = scalar_lea.vmem %s10_s7, 32 }
   0x8   :  { %p34_p3 = scmp.ne.s32.totalorder %s10_s7, %s33_s15  ;;  %p38_p4 = scmp.lt.s32.totalorder %s10_s7, %s10_s7 }
   0x9   :  { %p39_p5 = scmp.lt.s32.totalorder %s37_s16, %s33_s15 }
   0xb   :  { %p40_p6 = por %p39_p5, %p38_p4 }
   0xd   :  { %p41_p7 = pnand %p40_p6, %p34_p3 }
   0xf   :  { %44 = shalt.err (!%p41_p7)
}
  0x10   :  { %12 = dma.hbm_to_vmem [thread:$0]  %s76_s0, 16, %s10_s7, [#allocation1]  }
  0x11   :  { %45 = dma.done.wait [#allocation1], 16  }
  0x12   :  { %46 = vsyncadd [#allocation1], 4294967280  ;;  %v16_v0 = vld [vmem:[#allocation0] ss:$0 sm:$0xff] }
  0x13   :  { %17 = vst [vmem:[%s77_s1] sm:$0xff] %v16_v0  ;;  %21 = vst [vmem:[%s77_s1 + $0x8] sm:$0xff] %v16_v0 }
  0x14   :  { %20 = vsyncpa [#allocation1], 1 }

// kernel: final_patch_expand2d.1
= control target key start
LH: loop header
LB: loop body
LE: loop exit
PB: predicated region body
PF: predicated region fallthrough
CT: control target
= control target key end

     0   :  { %11 = vsyncpa [#allocation3], 0  ;;  %s2968_s0 = inlined_call_operand.hbm [shape: f32[512,64], index: 0, kind: input, shape index: {}]   ;;  %s2969_s1 = inlined_call_operand.vmem [shape: bf16[64,256], index: 1, kind: input, shape index: {}]   ;;  %s2970_s2 = inlined_call_operand.vmem [shape: bf16[256,16], index: 2, kind: input, shape index: {}]   ;;  %s2971_s3 = inlined_call_operand.vmem [shape: bf16[16,256], index: 3, kind: input, shape index: {}]   ;;  %s2972_s4 = inlined_call_operand.vmem [shape: f32[1,256], index: 4, kind: input, shape index: {}]   ;;  %s2973_s5 = inlined_call_operand.vmem [shape: f32[1,256], index: 5, kind: input, shape index: {}]   ;;  %s2974_s6 = inlined_call_operand.vmem [shape: f32[32,4,16,64], index: 6, kind: output, shape index: {}]  }
   0x1   :  { %13 = vsyncpa [#allocation3 + $0x1], 0  ;;  %s2118_s21 = smov 0   ;;  %s2120_s22 = smov 0  }
   0x2   :  { %s2122_s23 = smov 0   ;;  %s2124_s24 = smov 0  }
   0x3 LB: > { %s1656_s25 = sadd.s32 4294967295, %s2076_s24   ;;  %s2138_s26 = sadd.s32 1, %s2076_s24   ;;  %s2076_s24 = sphi %s2124_s24, %s2981_s24   ;;  %s2072_s23 = sphi %s2122_s23, %s2980_s23   ;;  %s2068_s22 = sphi %s2120_s22, %s2979_s22   ;;  %s2064_s21 = sphi %s2118_s21, %s2978_s21  }
   0x4   : > { %s23_s27 = ssub.s32 %s2076_s24, %s2138_s26  ;;  %s26_s28 = sadd.s32 1, %s2072_s23 }
   0x5   : > { %p24_p0 = scmp.eq.s32.totalorder %s23_s27, 0  ;;  %p33_p1 = scmp.ne.s32.totalorder %s2072_s23, %s2068_s22 }
   0x6   : > { %p34_p2 = scmp.eq.s32.totalorder %s2076_s24, 0  ;;  %p39_p3 = scmp.ne.s32.totalorder %s2068_s22, %s2064_s21 }
   0x7   : > { %s2148_s29 = scalar_select %p24_p0, %s2072_s23, %s26_s28  }
   0x8   : > { %p35_p4 = por %p34_p2, %p33_p1  ;;  %p40_p5 = scmp.eq.s32.totalorder %s1656_s25, 0 }
   0x9   : > { %p1912_p6 = scmp.lt.s32.totalorder %s2076_s24, 4  ;;  %s209_s7 = sand.u32 1, %s2072_s23  }
   0xa   : > { %p2153_p7 = por %p40_p5, %p39_p3  ;;  %s1660_s8 = sshll.u32 %s209_s7, 7 }
   0xb   : > { %s1768_s9 = sshll.u32 %s2076_s24, 11  ;;  %s213_s13 = scalar_lea.vmem [#allocation2], %s1660_s8 }
   0xc   : > { %s2162_s12 = scalar_lea.hbm %s2968_s0, %s1768_s9  ;;  %s220_s14 = sshll.u32 %s213_s13, 4  ;;  %s2164_s14 = int_to_ptr.vmem [resolvable:$true] %s220_s14 }
   0xd   : > { %p2166_p8 = pnand %p1912_p6, %p35_p4  ;;  %s2171_s16 = scalar_lea.sflag [#allocation3], %s209_s7 }
   0xe   : > { %s2012_s17 = scalar_lea.hbm %s2162_s12, 2048  ;;  %s2017_s20 = scalar_lea.hbm %s2968_s0, 8192 }
   0xf   : > { %p2013_p10 = scmp.ne.s32.totalorder %s2162_s12, %s2012_s17  ;;  %p2014_p11 = pneg %p2166_p8 }
  0x10   : > { %p2018_p0 = scmp.lt.u32.totalorder %s2162_s12, %s2968_s0  ;;  %p2019_p1 = scmp.lt.u32.totalorder %s2017_s20, %s2012_s17 }
  0x11   : > { %p2015_p12 = pnand %p2014_p11, %p2013_p10  ;;  %p2021_p3 = scmp.lt.u32.totalorder %s2012_s17, %s2162_s12 }
  0x12   : > { %p2020_p2 = por %p2019_p1, %p2018_p0 }
  0x13   : > { %p2016_p13 = pneg %p2015_p12 }
  0x14   : > { %p2022_p4 = por %p2021_p3, %p2020_p2 }
  0x16   : > { %p2023_p5 = pnand %p2022_p4, %p2016_p13 }
  0x18   : > { %2026 = shalt.err (!%p2023_p5)
}
  0x19   : > { %s2027_s28 = scalar_lea.vmem %s2164_s14, 2048  ;;  %s2078_s7 = smov [#allocation2]  }
  0x1a   : > { %p2028_p6 = scmp.ne.s32.totalorder %s2164_s14, %s2027_s28  ;;  %s2032_s8 = sshll.u32 %s2078_s7, 4  ;;  %s2033_s8 = int_to_ptr.vmem [resolvable:$false] %s2032_s8 }
  0x1b   : > { %s2034_s9 = scalar_lea.vmem %s2033_s8, 4096  ;;  %p2035_p9 = scmp.lt.s32.totalorder %s2164_s14, %s2033_s8 }
  0x1c   : > { %p2030_p10 = pnand %p2028_p6, %p2014_p11  ;;  %p2036_p0 = scmp.lt.s32.totalorder %s2034_s9, %s2027_s28 }
  0x1e   : > { %p2031_p12 = pneg %p2030_p10  ;;  %p2037_p1 = por %p2036_p0, %p2035_p9 }
  0x20   : > { %p2038_p2 = pnand %p2037_p1, %p2031_p12 }
  0x22   : > { %2041 = shalt.err (!%p2038_p2)
}
  0x23   : > { %s2079_s10 = smov 128   ;;  %s2080_s11 = smov 8  }
  0x24   : > { %1911 = dma.hbm_to_vmem [thread:$0]  (!%p2166_p8), %s2162_s12, 2048, %s2164_s14, %s2171_s16, %s2079_s10, %s2079_s10, %s2080_s11  }
  0x25   : > { %p228_p11 = scmp.lt.s32.totalorder %s2076_s24, 5  ;;  %p2977_p13 = scmp.ge.s32.totalorder %s2076_s24, 1 }
  0x27   : > { %p229_p3 = pnand %p2977_p13, %p228_p11 }
  0x28   : > { %s234_s13 = sand.u32 (!%p229_p3), 1, %s2068_s22  }
  0x29   : > { %232 = sbr.rel (%p229_p3) target bundleno = 1360 (0x550), region = 44  ;;  %s1664_s17 = sshll.u32 (!%p229_p3), %s234_s13, 7 }
  0x2a   : > { %s235_s18 = scalar_lea.sflag (!%p229_p3), [#allocation3], %s234_s13  ;;  %s2203_s19 = scalar_lea.vmem (!%p229_p3), [#allocation2], %s1664_s17 }
  0x30   : > { %2059 = dma.done.wait (%p2153_p7), %s235_s18, 2048  }
  0x31   : > { %2061 = vsyncadd (%p2153_p7), %s235_s18, 4294965248  ;;  %v2081_v0 = vmov 0   ;;  %v1949_v1 = vld [vmem:[%s2969_s1 + $0x4] ss:$8 sps:$4 sm:$0xff]   ;;  %v1951_v2 = vld [vmem:[%s2969_s1] ss:$8 sps:$4 sm:$0xff]  }
  0x32   : > { %406 = vmatprep.mubr.bf16.mxu0 %v2081_v0  ;;  %446 = vmatprep.mubr.bf16.mxu1 %v2081_v0  ;;  %v1952_v3 = vld [vmem:[%s2969_s1 + $0x14] ss:$8 sps:$4 sm:$0xff]   ;;  %v1954_v4 = vld [vmem:[%s2969_s1 + $0x10] ss:$8 sps:$4 sm:$0xff]   ;;  %v1955_v5 = vld [vmem:[%s2969_s1 + $0x24] ss:$8 sps:$4 sm:$0xff]  }
  0x33   : > { %374 = vmatprep.subr.bf16.mxu0 %v1949_v1  ;;  %1898 = vmatprep.subr.bf16.mxu1 %v1949_v1  ;;  %v1957_v6 = vld [vmem:[%s2969_s1 + $0x20] ss:$8 sps:$4 sm:$0xff]   ;;  %v1958_v7 = vld [vmem:[%s2969_s1 + $0x34] ss:$8 sps:$4 sm:$0xff]   ;;  %v1960_v8 = vld [vmem:[%s2969_s1 + $0x30] ss:$8 sps:$4 sm:$0xff]  }
  0x34   : > { %375 = vmatpush1.bf16.msra.mxu0 %v1951_v2  ;;  %1902 = vmatpush1.bf16.msra.mxu1 %v1951_v2  ;;  %v277_v9 = vld [vmem:[%s2203_s19] sm:$0xff]  ;;  %v278_v10 = vld [vmem:[%s2203_s19 + $0x8] sm:$0xff]  ;;  %vm349_vm0 = vcmask 523264   ;;  %v279_v17 = vld [vmem:[%s2203_s19 + $0x10] sm:$0xff]  ;;  %vm764_vm1 = vcmask 130048   ;;  %s1665_s12 = sshll.u32 %s1656_s25, 3 }
  0x35   : > { %376 = vmatprep.subr.bf16.mxu0 %v1952_v3  ;;  %1899 = vmatprep.subr.bf16.mxu1 %v1952_v3  ;;  %v285_v11 = vld [vmem:[%s2203_s19 + $0x40] sm:$0xff]  ;;  %v286_v12 = vld [vmem:[%s2203_s19 + $0x48] sm:$0xff]  ;;  %v293_v14 = vpack.c.bf16 %v278_v10, %v277_v9  ;;  %v280_v18 = vld [vmem:[%s2203_s19 + $0x18] sm:$0xff]  ;;  %p270_p7 = scmp.lt.s32.totalorder %s1665_s12, 31  ;;  %s2082_s27 = smov 64  }
  0x36   : > { %v2242_v13 = vld [vmem:[%s2970_s2 + $0x40] sm:$0xff]   ;;  %v297_v15 = vpack.c.bf16 %v286_v12, %v285_v11  ;;  %v2255_v19 = vld [vmem:[%s2970_s2 + $0x48] sm:$0xff]   ;;  %v287_v20 = vld [vmem:[%s2203_s19 + $0x50] sm:$0xff]  ;;  %v294_v24 = vpack.c.bf16 %v280_v18, %v279_v17 }
  0x37   : > { %v2248_v16 = vld [vmem:[%s2970_s2] sm:$0xff]   ;;  %v288_v21 = vld [vmem:[%s2203_s19 + $0x58] sm:$0xff]  ;;  %v2267_v22 = vld [vmem:[%s2970_s2 + $0x8] sm:$0xff]   ;;  %s2983_s12 = smov (!%p270_p7, %s1665_s12), 31 }
  0x38   : > { %377 = vmatpush1.bf16.msra.mxu0 %v1954_v4  ;;  %1903 = vmatpush1.bf16.msra.mxu1 %v1954_v4  ;;  %v2273_v23 = vld [vmem:[%s2970_s2 + $0x50] sm:$0xff]   ;;  %v298_v25 = vpack.c.bf16 %v288_v21, %v287_v20  ;;  %v2284_v27 = vld [vmem:[%s2970_s2 + $0x58] sm:$0xff]   ;;  %v281_v28 = vld [vmem:[%s2203_s19 + $0x20] sm:$0xff]  ;;  %s1769_s24 = sshll.u32 %s2983_s12, 6 }
  0x39   : > { %378 = vmatprep.subr.bf16.mxu0 %v1955_v5  ;;  %1900 = vmatprep.subr.bf16.mxu1 %v1955_v5  ;;  %v2278_v26 = vld [vmem:[%s2970_s2 + $0x10] sm:$0xff]   ;;  %v282_v29 = vld [vmem:[%s2203_s19 + $0x28] sm:$0xff]  ;;  %v289_v30 = vld [vmem:[%s2203_s19 + $0x60] sm:$0xff]  ;;  %s2703_s30 = scalar_lea.vmem %s2974_s6, %s1769_s24 }
  0x3a   : > { %v290_v31 = vld [vmem:[%s2203_s19 + $0x68] sm:$0xff]  ;;  %v2299_v32 = vld [vmem:[%s2970_s2 + $0x18] sm:$0xff]   ;;  %v2305_v33 = vld [vmem:[%s2970_s2 + $0x60] sm:$0xff]   ;;  %v295_v34 = vpack.c.bf16 %v282_v29, %v281_v28 }
  0x3b   : > { %v299_v35 = vpack.c.bf16 %v290_v31, %v289_v30  ;;  %v2311_v36 = vld [vmem:[%s2970_s2 + $0x20] sm:$0xff]   ;;  %v2317_v37 = vld [vmem:[%s2970_s2 + $0x68] sm:$0xff]   ;;  %v283_v38 = vld [vmem:[%s2203_s19 + $0x30] sm:$0xff] }
  0x3c   : > { %379 = vmatpush1.bf16.msra.mxu0 %v1957_v6  ;;  %1904 = vmatpush1.bf16.msra.mxu1 %v1957_v6  ;;  %v284_v39 = vld [vmem:[%s2203_s19 + $0x38] sm:$0xff]  ;;  %v291_v40 = vld [vmem:[%s2203_s19 + $0x70] sm:$0xff]  ;;  %v2331_v42 = vld [vmem:[%s2970_s2 + $0x28] sm:$0xff]  }
  0x3d   : > { %380 = vmatprep.subr.bf16.mxu0 %v1958_v7  ;;  %1901 = vmatprep.subr.bf16.mxu1 %v1958_v7  ;;  %v292_v41 = vld [vmem:[%s2203_s19 + $0x78] sm:$0xff]  ;;  %v2337_v43 = vld [vmem:[%s2970_s2 + $0x70] sm:$0xff]   ;;  %v296_v44 = vpack.c.bf16 %v284_v39, %v283_v38  ;;  %v2366_v49 = vld [vmem:[%s2971_s3] ss:$8 sps:$4 sm:$0xff]  }
  0x3e   : > { %v300_v45 = vpack.c.bf16 %v292_v41, %v291_v40  ;;  %v2343_v46 = vld [vmem:[%s2970_s2 + $0x30] sm:$0xff]   ;;  %v2353_v47 = vld [vmem:[%s2970_s2 + $0x78] sm:$0xff]   ;;  %v1979_v50 = vld [vmem:[%s2971_s3 + $0x4] ss:$8 sps:$4 sm:$0xff]  }
  0x3f   : > { %v2358_v48 = vld [vmem:[%s2970_s2 + $0x38] sm:$0xff]  }
  0x40   : > { %381 = vmatpush1.bf16.msra.mxu0 %v1960_v8  ;;  %1905 = vmatpush1.bf16.msra.mxu1 %v1960_v8 }
  0x41   : > { %1770 = vmatprep.subr.bf16.mxu1 %v2242_v13  ;;  %789 = vmatprep.subr.bf16.mxu0 %v1979_v50 }
  0x43   : > { %1676 = vmatmul.mubr.msk.bf16.vlgmr.msra.gmra.mrb[0].mxu0 %vm349_vm0, %v293_v14  ;;  %1680 = vmatmul.mubr.msk.bf16.vlgmr.msra.gmra.mrb[0].mxu1 %vm349_vm0, %v297_v15 }
  0x44   : > { %416 = vmatprep.mubr.bf16.mxu0 %v2081_v0  ;;  %456 = vmatprep.mubr.bf16.mxu1 %v2081_v0 }
  0x45   : > { %1771 = vmatpush3.bf16.msra.mxu1 %v2248_v16  ;;  %790 = vmatpush1.bf16.msra.mxu0 %v2366_v49 }
  0x46   : > { %1772 = vmatprep.subr.bf16.mxu1 %v2255_v19  ;;  %1159 = vmatprep.subr.bf16.mxu0 %v1979_v50 }
  0x49   : > { %1773 = vmatpush3.bf16.msra.mxu1 %v2267_v22 }
  0x4a   : > { %1774 = vmatprep.subr.bf16.mxu1 %v2273_v23 }
  0x4b   : > { %1677 = vmatmul.mubr.msk.bf16.gmra.mrb[4].mxu0 %vm349_vm0, %v294_v24  ;;  %1681 = vmatmul.mubr.msk.bf16.gmra.mrb[4].mxu1 %vm349_vm0, %v298_v25 }
  0x4c   : > { %426 = vmatprep.mubr.bf16.mxu0 %v2081_v0  ;;  %466 = vmatprep.mubr.bf16.mxu1 %v2081_v0 }
  0x4d   : > { %1775 = vmatpush3.bf16.msra.mxu1 %v2278_v26 }
  0x4e   : > { %1776 = vmatprep.subr.bf16.mxu1 %v2284_v27 }
  0x51   : > { %1777 = vmatpush3.bf16.msra.mxu1 %v2299_v32 }
  0x52   : > { %1778 = vmatprep.subr.bf16.mxu1 %v2305_v33 }
  0x53   : > { %1678 = vmatmul.mubr.msk.bf16.gmra.mrb[8].mxu0 %vm349_vm0, %v295_v34  ;;  %1682 = vmatmul.mubr.msk.bf16.gmra.mrb[8].mxu1 %vm349_vm0, %v299_v35 }
  0x54   : > { %436 = vmatprep.mubr.bf16.mxu0 %v2081_v0  ;;  %476 = vmatprep.mubr.bf16.mxu1 %v2081_v0 }
  0x55   : > { %1779 = vmatpush3.bf16.msra.mxu1 %v2311_v36 }
  0x56   : > { %1780 = vmatprep.subr.bf16.mxu1 %v2317_v37 }
  0x59   : > { %1781 = vmatpush3.bf16.msra.mxu1 %v2331_v42 }
  0x5a   : > { %1782 = vmatprep.subr.bf16.mxu1 %v2337_v43 }
  0x5b   : > { %1679 = vmatmul.mubr.msk.bf16.gmra.mrb[12].mxu0 %vm349_vm0, %v296_v44  ;;  %1683 = vmatmul.mubr.msk.bf16.gmra.mrb[12].mxu1 %vm349_vm0, %v300_v45 }
  0x5c   : > { %821 = vmatprep.mubr.bf16.mxu0 %v2081_v0 }
  0x5d   : > { %1783 = vmatpush3.bf16.msra.mxu1 %v2343_v46 }
  0x5e   : > { %1784 = vmatprep.subr.bf16.mxu1 %v2353_v47 }
  0x61   : > { %1785 = vmatpush3.bf16.msra.mxu1 %v2358_v48 }
  0x62   : > { %1834 = vmatprep.subr.bf16.mxu1 %v2242_v13 }
 0x116   : > { %v2372_v51 = vpop.f32.mrb[0].mxu0  ;;  %v2374_v52 = vpop.f32.mrb[0].mxu1 }
 0x117   : > { %v2376_v53 = vpop.f32.mrb[1].mxu0  ;;  %v2378_v54 = vpop.f32.mrb[1].mxu1 }
 0x118   : > { %v2380_v55 = vpop.f32.mrb[2].mxu0  ;;  %v2382_v56 = vpop.f32.mrb[2].mxu1 }
 0x119   : > { %v521_v57 = vpack.c.bf16 %v2380_v55, %v2372_v51  ;;  %v2386_v58 = vpop.f32.mrb[3].mxu0  ;;  %v529_v59 = vpack.c.bf16 %v2382_v56, %v2374_v52  ;;  %v2390_v60 = vpop.f32.mrb[3].mxu1 }
 0x11a   : > { %v522_v61 = vpack.c.bf16 %v2386_v58, %v2376_v53  ;;  %v530_v62 = vpack.c.bf16 %v2390_v60, %v2378_v54 }
 0x11c   : > { %665 = vmatprep.mubr.bf16.mxu1 %v522_v61 }
 0x11d   : > { %666 = vmatmul.mubr.bf16.vlgmr.msra.gmra.mrb[16].mxu1 %v521_v57 }
 0x11e   : > { %v2396_v63 = vpop.f32.mrb[4].mxu0  ;;  %v2398_v1 = vpop.f32.mrb[4].mxu1  ;;  %1835 = vmatpush3.bf16.msra.mxu1 %v2248_v16 }
 0x11f   : > { %v2401_v2 = vpop.f32.mrb[5].mxu0  ;;  %v2403_v3 = vpop.f32.mrb[5].mxu1  ;;  %1836 = vmatprep.subr.bf16.mxu1 %v2255_v19 }
 0x120   : > { %v2406_v4 = vpop.f32.mrb[6].mxu0  ;;  %v2408_v5 = vpop.f32.mrb[6].mxu1 }
 0x121   : > { %v523_v6 = vpack.c.bf16 %v2406_v4, %v2396_v63  ;;  %v2412_v7 = vpop.f32.mrb[7].mxu0  ;;  %v531_v8 = vpack.c.bf16 %v2408_v5, %v2398_v1  ;;  %v2416_v9 = vpop.f32.mrb[7].mxu1 }
 0x122   : > { %v524_v10 = vpack.c.bf16 %v2412_v7, %v2401_v2  ;;  %v532_v11 = vpack.c.bf16 %v2416_v9, %v2403_v3  ;;  %1837 = vmatpush3.bf16.msra.mxu1 %v2267_v22 }
 0x123   : > { %1838 = vmatprep.subr.bf16.mxu1 %v2273_v23 }
 0x124   : > { %673 = vmatprep.mubr.bf16.mxu1 %v524_v10 }
 0x125   : > { %674 = vmatmul.mubr.bf16.gmra.mrb[20].mxu1 %v523_v6 }
 0x126   : > { %v2424_v12 = vpop.f32.mrb[8].mxu0  ;;  %v2426_v13 = vpop.f32.mrb[8].mxu1  ;;  %1839 = vmatpush3.bf16.msra.mxu1 %v2278_v26 }
 0x127   : > { %v2429_v14 = vpop.f32.mrb[9].mxu0  ;;  %v2431_v15 = vpop.f32.mrb[9].mxu1  ;;  %1840 = vmatprep.subr.bf16.mxu1 %v2284_v27 }
 0x128   : > { %v2434_v16 = vpop.f32.mrb[10].mxu0  ;;  %v2436_v17 = vpop.f32.mrb[10].mxu1 }
 0x129   : > { %v525_v18 = vpack.c.bf16 %v2434_v16, %v2424_v12  ;;  %v2440_v19 = vpop.f32.mrb[11].mxu0  ;;  %v533_v20 = vpack.c.bf16 %v2436_v17, %v2426_v13  ;;  %v2444_v21 = vpop.f32.mrb[11].mxu1 }
 0x12a   : > { %v526_v22 = vpack.c.bf16 %v2440_v19, %v2429_v14  ;;  %v534_v23 = vpack.c.bf16 %v2444_v21, %v2431_v15  ;;  %1841 = vmatpush3.bf16.msra.mxu1 %v2299_v32 }
 0x12b   : > { %1842 = vmatprep.subr.bf16.mxu1 %v2305_v33 }
 0x12c   : > { %681 = vmatprep.mubr.bf16.mxu1 %v526_v22 }
 0x12d   : > { %682 = vmatmul.mubr.bf16.gmra.mrb[24].mxu1 %v525_v18 }
 0x12e   : > { %v2452_v24 = vpop.f32.mrb[12].mxu0  ;;  %v2454_v25 = vpop.f32.mrb[12].mxu1  ;;  %1843 = vmatpush3.bf16.msra.mxu1 %v2311_v36 }
 0x12f   : > { %v2457_v26 = vpop.f32.mrb[13].mxu0  ;;  %v2459_v27 = vpop.f32.mrb[13].mxu1  ;;  %1844 = vmatprep.subr.bf16.mxu1 %v2317_v37 }
 0x130   : > { %v2462_v28 = vpop.f32.mrb[14].mxu0  ;;  %v2464_v29 = vpop.f32.mrb[14].mxu1 }
 0x131   : > { %v527_v30 = vpack.c.bf16 %v2462_v28, %v2452_v24  ;;  %v2468_v31 = vpop.f32.mrb[15].mxu0  ;;  %v535_v32 = vpack.c.bf16 %v2464_v29, %v2454_v25  ;;  %v2472_v33 = vpop.f32.mrb[15].mxu1 }
 0x132   : > { %v528_v34 = vpack.c.bf16 %v2468_v31, %v2457_v26  ;;  %v536_v35 = vpack.c.bf16 %v2472_v33, %v2459_v27  ;;  %1845 = vmatpush3.bf16.msra.mxu1 %v2331_v42 }
 0x133   : > { %1846 = vmatprep.subr.bf16.mxu1 %v2337_v43 }
 0x134   : > { %689 = vmatprep.mubr.bf16.mxu1 %v528_v34 }
 0x135   : > { %690 = vmatmul.mubr.bf16.gmra.mrb[28].mxu1 %v527_v30 }
 0x136   : > { %697 = vmatprep.mubr.bf16.mxu1 %v530_v62  ;;  %1847 = vmatpush3.bf16.msra.mxu1 %v2343_v46 }
 0x137   : > { %1848 = vmatprep.subr.bf16.mxu1 %v2353_v47 }
 0x13a   : > { %1849 = vmatpush3.bf16.msra.mxu1 %v2358_v48 }
 0x13d   : > { %698 = vmatmul.mubr.bf16.gmra.mrb[32].mxu1 %v529_v59 }
 0x13e   : > { %705 = vmatprep.mubr.bf16.mxu1 %v532_v11 }
 0x145   : > { %706 = vmatmul.mubr.bf16.gmra.mrb[36].mxu1 %v531_v8 }
 0x146   : > { %713 = vmatprep.mubr.bf16.mxu1 %v534_v23 }
 0x14d   : > { %714 = vmatmul.mubr.bf16.gmra.mrb[40].mxu1 %v533_v20 }
 0x14e   : > { %721 = vmatprep.mubr.bf16.mxu1 %v536_v35 }
 0x155   : > { %722 = vmatmul.mubr.bf16.gmra.mrb[44].mxu1 %v535_v32 }
 0x1f0   : > { %v1786_v36 = vpop.f32.mrb[16].mxu1 }
 0x1f1   : > { %v1787_v37 = vpop.f32.mrb[17].mxu1 }
 0x1f2   : > { %v1788_v38 = vadd.f32 %v1787_v37, %v1786_v36  ;;  %v1789_v39 = vpop.f32.mrb[18].mxu1 }
 0x1f3   : > { %v1790_v40 = vpop.f32.mrb[19].mxu1 }
 0x1f4   : > { %v1791_v41 = vadd.f32 %v1790_v40, %v1789_v39  ;;  %v730_v42 = vmul.f32 0.0625, %v1788_v38 }
 0x1f6   : > { %v731_v43 = vmul.f32 0.0625, %v1791_v41 }
 0x1f8   : > { %v746_v44 = vpack.c.bf16 %v731_v43, %v730_v42  ;;  %v1792_v45 = vpop.f32.mrb[20].mxu1 }
 0x1f9   : > { %v1793_v46 = vpop.f32.mrb[21].mxu1 }
 0x1fa   : > { %v1794_v47 = vadd.f32 %v1793_v46, %v1792_v45  ;;  %v1795_v48 = vpop.f32.mrb[22].mxu1  ;;  %1702 = vmatmul.mubr.msk.bf16.vlgmr.msra.gmra.mrb[16].mxu0 %vm764_vm1, %v746_v44 }
 0x1fb   : > { %v1796_v50 = vpop.f32.mrb[23].mxu1  ;;  %831 = vmatprep.mubr.bf16.mxu0 %v2081_v0  ;;  %1160 = vmatpush1.bf16.msra.mxu0 %v2366_v49 }
 0x1fc   : > { %v1797_v57 = vadd.f32 %v1796_v50, %v1795_v48  ;;  %v732_v59 = vmul.f32 0.0625, %v1794_v47 }
 0x1fe   : > { %v733_v61 = vmul.f32 0.0625, %v1797_v57 }
 0x200   : > { %v747_v62 = vpack.c.bf16 %v733_v61, %v732_v59  ;;  %v1798_v6 = vpop.f32.mrb[24].mxu1 }
 0x201   : > { %v1799_v8 = vpop.f32.mrb[25].mxu1 }
 0x202   : > { %v1800_v10 = vadd.f32 %v1799_v8, %v1798_v6  ;;  %v1801_v11 = vpop.f32.mrb[26].mxu1  ;;  %1703 = vmatmul.mubr.msk.bf16.gmra.mrb[20].mxu0 %vm764_vm1, %v747_v62 }
 0x203   : > { %v1802_v18 = vpop.f32.mrb[27].mxu1  ;;  %841 = vmatprep.mubr.bf16.mxu0 %v2081_v0 }
 0x204   : > { %v1803_v20 = vadd.f32 %v1802_v18, %v1801_v11  ;;  %v734_v22 = vmul.f32 0.0625, %v1800_v10 }
 0x206   : > { %v735_v23 = vmul.f32 0.0625, %v1803_v20 }
 0x208   : > { %v748_v30 = vpack.c.bf16 %v735_v23, %v734_v22  ;;  %v1804_v32 = vpop.f32.mrb[28].mxu1 }
 0x209   : > { %v1805_v34 = vpop.f32.mrb[29].mxu1 }
 0x20a   : > { %v1806_v49 = vadd.f32 %v1805_v34, %v1804_v32  ;;  %v1807_v35 = vpop.f32.mrb[30].mxu1  ;;  %1704 = vmatmul.mubr.msk.bf16.gmra.mrb[24].mxu0 %vm764_vm1, %v748_v30 }
 0x20b   : > { %v1808_v36 = vpop.f32.mrb[31].mxu1  ;;  %851 = vmatprep.mubr.bf16.mxu0 %v2081_v0 }
 0x20c   : > { %v1809_v37 = vadd.f32 %v1808_v36, %v1807_v35  ;;  %v736_v38 = vmul.f32 0.0625, %v1806_v49 }
 0x20e   : > { %v737_v39 = vmul.f32 0.0625, %v1809_v37 }
 0x210   : > { %v749_v40 = vpack.c.bf16 %v737_v39, %v736_v38  ;;  %v1810_v41 = vpop.f32.mrb[32].mxu1 }
 0x211   : > { %v1811_v42 = vpop.f32.mrb[33].mxu1 }
 0x212   : > { %v1812_v43 = vadd.f32 %v1811_v42, %v1810_v41  ;;  %v1813_v44 = vpop.f32.mrb[34].mxu1  ;;  %1705 = vmatmul.mubr.msk.bf16.gmra.mrb[28].mxu0 %vm764_vm1, %v749_v40 }
 0x213   : > { %v1814_v45 = vpop.f32.mrb[35].mxu1  ;;  %861 = vmatprep.mubr.bf16.mxu0 %v2081_v0 }
 0x214   : > { %v1815_v46 = vadd.f32 %v1814_v45, %v1813_v44  ;;  %v738_v47 = vmul.f32 0.0625, %v1812_v43 }
 0x216   : > { %v739_v48 = vmul.f32 0.0625, %v1815_v46 }
 0x218   : > { %v750_v50 = vpack.c.bf16 %v739_v48, %v738_v47  ;;  %v1816_v57 = vpop.f32.mrb[36].mxu1 }
 0x219   : > { %v1817_v59 = vpop.f32.mrb[37].mxu1 }
 0x21a   : > { %v1818_v61 = vadd.f32 %v1817_v59, %v1816_v57  ;;  %v1819_v62 = vpop.f32.mrb[38].mxu1  ;;  %1706 = vmatmul.mubr.msk.bf16.gmra.mrb[32].mxu0 %vm764_vm1, %v750_v50 }
 0x21b   : > { %v1820_v6 = vpop.f32.mrb[39].mxu1  ;;  %871 = vmatprep.mubr.bf16.mxu0 %v2081_v0 }
 0x21c   : > { %v1821_v8 = vadd.f32 %v1820_v6, %v1819_v62  ;;  %v740_v10 = vmul.f32 0.0625, %v1818_v61 }
 0x21e   : > { %v741_v11 = vmul.f32 0.0625, %v1821_v8 }
 0x220   : > { %v751_v18 = vpack.c.bf16 %v741_v11, %v740_v10  ;;  %v1822_v20 = vpop.f32.mrb[40].mxu1 }
 0x221   : > { %v1823_v22 = vpop.f32.mrb[41].mxu1 }
 0x222   : > { %v1824_v23 = vadd.f32 %v1823_v22, %v1822_v20  ;;  %v1825_v30 = vpop.f32.mrb[42].mxu1  ;;  %1707 = vmatmul.mubr.msk.bf16.gmra.mrb[36].mxu0 %vm764_vm1, %v751_v18 }
 0x223   : > { %v1826_v32 = vpop.f32.mrb[43].mxu1  ;;  %881 = vmatprep.mubr.bf16.mxu0 %v2081_v0 }
 0x224   : > { %v1827_v34 = vadd.f32 %v1826_v32, %v1825_v30  ;;  %v742_v49 = vmul.f32 0.0625, %v1824_v23 }
 0x226   : > { %v743_v35 = vmul.f32 0.0625, %v1827_v34 }
 0x228   : > { %v752_v36 = vpack.c.bf16 %v743_v35, %v742_v49  ;;  %v1828_v37 = vpop.f32.mrb[44].mxu1 }
 0x229   : > { %v1829_v38 = vpop.f32.mrb[45].mxu1 }
 0x22a   : > { %v1830_v39 = vadd.f32 %v1829_v38, %v1828_v37  ;;  %v1831_v40 = vpop.f32.mrb[46].mxu1  ;;  %1708 = vmatmul.mubr.msk.bf16.gmra.mrb[40].mxu0 %vm764_vm1, %v752_v36 }
 0x22b   : > { %v1832_v41 = vpop.f32.mrb[47].mxu1  ;;  %891 = vmatprep.mubr.bf16.mxu0 %v2081_v0 }
 0x22c   : > { %v1833_v42 = vadd.f32 %v1832_v41, %v1831_v40  ;;  %v744_v43 = vmul.f32 0.0625, %v1830_v39 }
 0x22e   : > { %v745_v44 = vmul.f32 0.0625, %v1833_v42 }
 0x230   : > { %v753_v45 = vpack.c.bf16 %v745_v44, %v744_v43 }
 0x232   : > { %1709 = vmatmul.mubr.msk.bf16.gmra.mrb[44].mxu0 %vm764_vm1, %v753_v45 }
 0x233   : > { %1191 = vmatprep.mubr.bf16.mxu0 %v2081_v0 }
 0x2cd   : > { %v823_v46 = vpop.f32.mrb[16].mxu0 }
 0x2ce   : > { %v2504_v47 = vsub.f32 %v2372_v51, %v823_v46  ;;  %v825_v48 = vpop.f32.mrb[17].mxu0 }
 0x2cf   : > { %v2507_v50 = vsub.f32 %v2376_v53, %v825_v48  ;;  %v827_v57 = vpop.f32.mrb[18].mxu0 }
 0x2d0   : > { %v2510_v59 = vsub.f32 %v2380_v55, %v827_v57  ;;  %v829_v61 = vpop.f32.mrb[19].mxu0  ;;  %v934_v53 = vmul.f32 %v2504_v47, %v2504_v47 }
 0x2d1   : > { %v2513_v62 = vsub.f32 %v2386_v58, %v829_v61  ;;  %v935_v8 = vmul.f32 %v2507_v50, %v2507_v50 }
 0x2d2   : > { %v936_v6 = vmul.f32 %v2510_v59, %v2510_v59 }
 0x2d3   : > { %v937_v51 = vmul.f32 %v2513_v62, %v2513_v62 }
 0x2d4   : > { %v966_v55 = vpack.c.bf16 %v936_v6, %v934_v53 }
 0x2d5   : > { %v833_v10 = vpop.f32.mrb[20].mxu0  ;;  %v967_v11 = vpack.c.bf16 %v937_v51, %v935_v8 }
 0x2d6   : > { %v2524_v18 = vsub.f32 %v2396_v63, %v833_v10  ;;  %v835_v58 = vpop.f32.mrb[21].mxu0 }
 0x2d7   : > { %v2527_v20 = vsub.f32 %v2401_v2, %v835_v58  ;;  %v837_v22 = vpop.f32.mrb[22].mxu0  ;;  %1014 = vmatprep.mubr.bf16.mxu1 %v967_v11 }
 0x2d8   : > { %v2530_v23 = vsub.f32 %v2406_v4, %v837_v22  ;;  %v839_v30 = vpop.f32.mrb[23].mxu0  ;;  %1015 = vmatmul.mubr.bf16.vlgmr.msra.gmra.mrb[48].mxu1 %v966_v55  ;;  %v938_v49 = vmul.f32 %v2524_v18, %v2524_v18 }
 0x2d9   : > { %v2533_v32 = vsub.f32 %v2412_v7, %v839_v30  ;;  %v939_v63 = vmul.f32 %v2527_v20, %v2527_v20 }
 0x2da   : > { %v940_v34 = vmul.f32 %v2530_v23, %v2530_v23 }
 0x2db   : > { %v941_v2 = vmul.f32 %v2533_v32, %v2533_v32 }
 0x2dc   : > { %v968_v7 = vpack.c.bf16 %v940_v34, %v938_v49 }
 0x2dd   : > { %v843_v35 = vpop.f32.mrb[24].mxu0  ;;  %v969_v4 = vpack.c.bf16 %v941_v2, %v939_v63 }
 0x2de   : > { %v2544_v36 = vsub.f32 %v2424_v12, %v843_v35  ;;  %v845_v37 = vpop.f32.mrb[25].mxu0 }
 0x2df   : > { %v2547_v38 = vsub.f32 %v2429_v14, %v845_v37  ;;  %v847_v39 = vpop.f32.mrb[26].mxu0  ;;  %1022 = vmatprep.mubr.bf16.mxu1 %v969_v4 }
 0x2e0   : > { %v2550_v40 = vsub.f32 %v2434_v16, %v847_v39  ;;  %v849_v41 = vpop.f32.mrb[27].mxu0  ;;  %1023 = vmatmul.mubr.bf16.gmra.mrb[52].mxu1 %v968_v7  ;;  %v942_v44 = vmul.f32 %v2544_v36, %v2544_v36 }
 0x2e1   : > { %v2553_v42 = vsub.f32 %v2440_v19, %v849_v41  ;;  %v943_v12 = vmul.f32 %v2547_v38, %v2547_v38 }
 0x2e2   : > { %v944_v43 = vmul.f32 %v2550_v40, %v2550_v40 }
 0x2e3   : > { %v945_v14 = vmul.f32 %v2553_v42, %v2553_v42 }
 0x2e4   : > { %v970_v19 = vpack.c.bf16 %v944_v43, %v942_v44 }
 0x2e5   : > { %v853_v45 = vpop.f32.mrb[28].mxu0  ;;  %v971_v16 = vpack.c.bf16 %v945_v14, %v943_v12 }
 0x2e6   : > { %v2564_v46 = vsub.f32 %v2452_v24, %v853_v45  ;;  %v855_v48 = vpop.f32.mrb[29].mxu0 }
 0x2e7   : > { %v2567_v57 = vsub.f32 %v2457_v26, %v855_v48  ;;  %v857_v61 = vpop.f32.mrb[30].mxu0  ;;  %1030 = vmatprep.mubr.bf16.mxu1 %v971_v16 }
 0x2e8   : > { %v2570_v6 = vsub.f32 %v2462_v28, %v857_v61  ;;  %v859_v8 = vpop.f32.mrb[31].mxu0  ;;  %1031 = vmatmul.mubr.bf16.gmra.mrb[56].mxu1 %v970_v19  ;;  %v946_v10 = vmul.f32 %v2564_v46, %v2564_v46 }
 0x2e9   : > { %v2573_v51 = vsub.f32 %v2468_v31, %v859_v8  ;;  %v947_v24 = vmul.f32 %v2567_v57, %v2567_v57 }
 0x2ea   : > { %v948_v53 = vmul.f32 %v2570_v6, %v2570_v6 }
 0x2eb   : > { %v949_v26 = vmul.f32 %v2573_v51, %v2573_v51 }
 0x2ec   : > { %v972_v31 = vpack.c.bf16 %v948_v53, %v946_v10 }
 0x2ed   : > { %v863_v11 = vpop.f32.mrb[32].mxu0  ;;  %v973_v28 = vpack.c.bf16 %v949_v26, %v947_v24 }
 0x2ee   : > { %v2584_v55 = vsub.f32 %v2374_v52, %v863_v11  ;;  %v865_v58 = vpop.f32.mrb[33].mxu0 }
 0x2ef   : > { %v2587_v22 = vsub.f32 %v2378_v54, %v865_v58  ;;  %v867_v30 = vpop.f32.mrb[34].mxu0  ;;  %1038 = vmatprep.mubr.bf16.mxu1 %v973_v28 }
 0x2f0   : > { %v2590_v34 = vsub.f32 %v2382_v56, %v867_v30  ;;  %v869_v63 = vpop.f32.mrb[35].mxu0  ;;  %1039 = vmatmul.mubr.bf16.gmra.mrb[60].mxu1 %v972_v31  ;;  %v950_v35 = vmul.f32 %v2584_v55, %v2584_v55 }
 0x2f1   : > { %v2593_v2 = vsub.f32 %v2390_v60, %v869_v63  ;;  %v951_v52 = vmul.f32 %v2587_v22, %v2587_v22 }
 0x2f2   : > { %v952_v49 = vmul.f32 %v2590_v34, %v2590_v34 }
 0x2f3   : > { %v953_v54 = vmul.f32 %v2593_v2, %v2593_v2 }
 0x2f4   : > { %v974_v60 = vpack.c.bf16 %v952_v49, %v950_v35 }
 0x2f5   : > { %v873_v4 = vpop.f32.mrb[36].mxu0  ;;  %v975_v56 = vpack.c.bf16 %v953_v54, %v951_v52 }
 0x2f6   : > { %v2604_v37 = vsub.f32 %v2398_v1, %v873_v4  ;;  %v875_v7 = vpop.f32.mrb[37].mxu0 }
 0x2f7   : > { %v2607_v39 = vsub.f32 %v2403_v3, %v875_v7  ;;  %v877_v41 = vpop.f32.mrb[38].mxu0  ;;  %1046 = vmatprep.mubr.bf16.mxu1 %v975_v56 }
 0x2f8   : > { %v2610_v43 = vsub.f32 %v2408_v5, %v877_v41  ;;  %v879_v12 = vpop.f32.mrb[39].mxu0  ;;  %1047 = vmatmul.mubr.bf16.gmra.mrb[64].mxu1 %v974_v60  ;;  %v954_v45 = vmul.f32 %v2604_v37, %v2604_v37 }
 0x2f9   : > { %v2613_v14 = vsub.f32 %v2416_v9, %v879_v12  ;;  %v955_v1 = vmul.f32 %v2607_v39, %v2607_v39 }
 0x2fa   : > { %v956_v44 = vmul.f32 %v2610_v43, %v2610_v43 }
 0x2fb   : > { %v957_v3 = vmul.f32 %v2613_v14, %v2613_v14 }
 0x2fc   : > { %v976_v9 = vpack.c.bf16 %v956_v44, %v954_v45 }
 0x2fd   : > { %v883_v16 = vpop.f32.mrb[40].mxu0  ;;  %v977_v5 = vpack.c.bf16 %v957_v3, %v955_v1 }
 0x2fe   : > { %v2624_v48 = vsub.f32 %v2426_v13, %v883_v16  ;;  %v885_v19 = vpop.f32.mrb[41].mxu0 }
 0x2ff   : > { %v2627_v61 = vsub.f32 %v2431_v15, %v885_v19  ;;  %v887_v8 = vpop.f32.mrb[42].mxu0  ;;  %1054 = vmatprep.mubr.bf16.mxu1 %v977_v5 }
 0x300   : > { %v2630_v53 = vsub.f32 %v2436_v17, %v887_v8  ;;  %v889_v24 = vpop.f32.mrb[43].mxu0  ;;  %1055 = vmatmul.mubr.bf16.gmra.mrb[68].mxu1 %v976_v9  ;;  %v958_v11 = vmul.f32 %v2624_v48, %v2624_v48 }
 0x301   : > { %v2633_v26 = vsub.f32 %v2444_v21, %v889_v24  ;;  %v959_v13 = vmul.f32 %v2627_v61, %v2627_v61 }
 0x302   : > { %v960_v10 = vmul.f32 %v2630_v53, %v2630_v53 }
 0x303   : > { %v961_v15 = vmul.f32 %v2633_v26, %v2633_v26 }
 0x304   : > { %v978_v21 = vpack.c.bf16 %v960_v10, %v958_v11 }
 0x305   : > { %v893_v28 = vpop.f32.mrb[44].mxu0  ;;  %v979_v17 = vpack.c.bf16 %v961_v15, %v959_v13 }
 0x306   : > { %v2644_v58 = vsub.f32 %v2454_v25, %v893_v28  ;;  %v895_v31 = vpop.f32.mrb[45].mxu0 }
 0x307   : > { %v2647_v30 = vsub.f32 %v2459_v27, %v895_v31  ;;  %v897_v63 = vpop.f32.mrb[46].mxu0  ;;  %1062 = vmatprep.mubr.bf16.mxu1 %v979_v17 }
 0x308   : > { %v2650_v49 = vsub.f32 %v2464_v29, %v897_v63  ;;  %v899_v52 = vpop.f32.mrb[47].mxu0  ;;  %1063 = vmatmul.mubr.bf16.gmra.mrb[72].mxu1 %v978_v21  ;;  %v962_v4 = vmul.f32 %v2644_v58, %v2644_v58 }
 0x309   : > { %v2653_v54 = vsub.f32 %v2472_v33, %v899_v52  ;;  %v963_v25 = vmul.f32 %v2647_v30, %v2647_v30 }
 0x30a   : > { %v964_v35 = vmul.f32 %v2650_v49, %v2650_v49 }
 0x30b   : > { %v965_v27 = vmul.f32 %v2653_v54, %v2653_v54 }
 0x30c   : > { %v980_v29 = vpack.c.bf16 %v964_v35, %v962_v4 }
 0x30d   : > { %v981_v56 = vpack.c.bf16 %v965_v27, %v963_v25 }
 0x30f   : > { %1070 = vmatprep.mubr.bf16.mxu1 %v981_v56 }
 0x310   : > { %1071 = vmatmul.mubr.bf16.gmra.mrb[76].mxu1 %v980_v29 }
 0x3ab   : > { %v1850_v7 = vpop.f32.mrb[48].mxu1 }
 0x3ac   : > { %v1851_v60 = vpop.f32.mrb[49].mxu1 }
 0x3ad   : > { %v1852_v33 = vadd.f32 %v1851_v60, %v1850_v7  ;;  %v1853_v41 = vpop.f32.mrb[50].mxu1 }
 0x3ae   : > { %v1854_v12 = vpop.f32.mrb[51].mxu1 }
 0x3af   : > { %v1079_v44 = vmul.f32 0.0625, %v1852_v33  ;;  %v1855_v1 = vadd.f32 %v1854_v12, %v1853_v41 }
 0x3b1   : > { %v1095_v3 = vadd.f32 1e-05, %v1079_v44  ;;  %v1080_v45 = vmul.f32 0.0625, %v1855_v1 }
 0x3b3   : > { %v1096_v16 = vadd.f32 1e-05, %v1080_v45  ;;  %v1856_v5 = vpop.f32.mrb[52].mxu1  ;;  %1980 = vrsqrt.f32 %v1095_v3 }
 0x3b4   : > { %v1857_v19 = vpop.f32.mrb[53].mxu1 }
 0x3b5   : > { %1982 = vrsqrt.f32 %v1096_v16  ;;  %v1858_v9 = vadd.f32 %v1857_v19, %v1856_v5  ;;  %v1859_v8 = vpop.f32.mrb[54].mxu1 }
 0x3b6   : > { %v1860_v24 = vpop.f32.mrb[55].mxu1 }
 0x3b7   : > { %v1081_v10 = vmul.f32 0.0625, %v1858_v9  ;;  %v1861_v13 = vadd.f32 %v1860_v24, %v1859_v8 }
 0x3b9   : > { %v1097_v15 = vadd.f32 1e-05, %v1081_v10  ;;  %v1082_v11 = vmul.f32 0.0625, %v1861_v13 }
 0x3bb   : > { %v1098_v28 = vadd.f32 1e-05, %v1082_v11  ;;  %v1862_v17 = vpop.f32.mrb[56].mxu1  ;;  %1984 = vrsqrt.f32 %v1097_v15 }
 0x3bc   : > { %v1863_v31 = vpop.f32.mrb[57].mxu1 }
 0x3bd   : > { %1986 = vrsqrt.f32 %v1098_v28  ;;  %v1864_v21 = vadd.f32 %v1863_v31, %v1862_v17  ;;  %v1865_v63 = vpop.f32.mrb[58].mxu1  ;;  %v1981_v52 = vpop.eup %1980 }
 0x3be   : > { %v1866_v35 = vpop.f32.mrb[59].mxu1 }
 0x3bf   : > { %v1983_v25 = vpop.eup %1982  ;;  %v1083_v27 = vmul.f32 0.0625, %v1864_v21  ;;  %v1867_v4 = vadd.f32 %v1866_v35, %v1865_v63 }
 0x3c0   : > { %v1127_v56 = vpack.c.bf16 %v1983_v25, %v1981_v52 }
 0x3c1   : > { %v1099_v29 = vadd.f32 1e-05, %v1083_v27  ;;  %v1084_v7 = vmul.f32 0.0625, %v1867_v4 }
 0x3c2   : > { %1710 = vmatmul.mubr.msk.bf16.vlgmr.msra.gmra.mrb[48].mxu0 %vm764_vm1, %v1127_v56 }
 0x3c3   : > { %v1100_v60 = vadd.f32 1e-05, %v1084_v7  ;;  %v1868_v33 = vpop.f32.mrb[60].mxu1  ;;  %1201 = vmatprep.mubr.bf16.mxu0 %v2081_v0  ;;  %1988 = vrsqrt.f32 %v1099_v29 }
 0x3c4   : > { %v1869_v41 = vpop.f32.mrb[61].mxu1 }
 0x3c5   : > { %1990 = vrsqrt.f32 %v1100_v60  ;;  %v1870_v12 = vadd.f32 %v1869_v41, %v1868_v33  ;;  %v1871_v44 = vpop.f32.mrb[62].mxu1  ;;  %v1985_v1 = vpop.eup %1984 }
 0x3c6   : > { %v1872_v3 = vpop.f32.mrb[63].mxu1 }
 0x3c7   : > { %v1987_v45 = vpop.eup %1986  ;;  %v1085_v16 = vmul.f32 0.0625, %v1870_v12  ;;  %v1873_v5 = vadd.f32 %v1872_v3, %v1871_v44 }
 0x3c8   : > { %v1128_v19 = vpack.c.bf16 %v1987_v45, %v1985_v1 }
 0x3c9   : > { %v1101_v9 = vadd.f32 1e-05, %v1085_v16  ;;  %v1086_v8 = vmul.f32 0.0625, %v1873_v5 }
 0x3ca   : > { %1711 = vmatmul.mubr.msk.bf16.gmra.mrb[52].mxu0 %vm764_vm1, %v1128_v19 }
 0x3cb   : > { %v1102_v24 = vadd.f32 1e-05, %v1086_v8  ;;  %v1874_v10 = vpop.f32.mrb[64].mxu1  ;;  %1211 = vmatprep.mubr.bf16.mxu0 %v2081_v0  ;;  %1992 = vrsqrt.f32 %v1101_v9 }
 0x3cc   : > { %v1875_v13 = vpop.f32.mrb[65].mxu1 }
 0x3cd   : > { %1994 = vrsqrt.f32 %v1102_v24  ;;  %v1876_v15 = vadd.f32 %v1875_v13, %v1874_v10  ;;  %v1877_v11 = vpop.f32.mrb[66].mxu1  ;;  %v1989_v28 = vpop.eup %1988 }
 0x3ce   : > { %v1878_v17 = vpop.f32.mrb[67].mxu1 }
 0x3cf   : > { %v1991_v31 = vpop.eup %1990  ;;  %v1087_v21 = vmul.f32 0.0625, %v1876_v15  ;;  %v1879_v63 = vadd.f32 %v1878_v17, %v1877_v11 }
 0x3d0   : > { %v1129_v52 = vpack.c.bf16 %v1991_v31, %v1989_v28 }
 0x3d1   : > { %v1103_v35 = vadd.f32 1e-05, %v1087_v21  ;;  %v1088_v25 = vmul.f32 0.0625, %v1879_v63 }
 0x3d2   : > { %1712 = vmatmul.mubr.msk.bf16.gmra.mrb[56].mxu0 %vm764_vm1, %v1129_v52 }
 0x3d3   : > { %v1104_v27 = vadd.f32 1e-05, %v1088_v25  ;;  %v1880_v4 = vpop.f32.mrb[68].mxu1  ;;  %1221 = vmatprep.mubr.bf16.mxu0 %v2081_v0  ;;  %1996 = vrsqrt.f32 %v1103_v35 }
 0x3d4   : > { %v1881_v56 = vpop.f32.mrb[69].mxu1 }
 0x3d5   : > { %1998 = vrsqrt.f32 %v1104_v27  ;;  %v1882_v29 = vadd.f32 %v1881_v56, %v1880_v4  ;;  %v1883_v7 = vpop.f32.mrb[70].mxu1  ;;  %v1993_v60 = vpop.eup %1992 }
 0x3d6   : > { %v1884_v33 = vpop.f32.mrb[71].mxu1 }
 0x3d7   : > { %v1995_v41 = vpop.eup %1994  ;;  %v1089_v12 = vmul.f32 0.0625, %v1882_v29  ;;  %v1885_v44 = vadd.f32 %v1884_v33, %v1883_v7 }
 0x3d8   : > { %v1130_v1 = vpack.c.bf16 %v1995_v41, %v1993_v60 }
 0x3d9   : > { %v1105_v3 = vadd.f32 1e-05, %v1089_v12  ;;  %v1090_v45 = vmul.f32 0.0625, %v1885_v44 }
 0x3da   : > { %1713 = vmatmul.mubr.msk.bf16.gmra.mrb[60].mxu0 %vm764_vm1, %v1130_v1 }
 0x3db   : > { %v1106_v16 = vadd.f32 1e-05, %v1090_v45  ;;  %v1886_v5 = vpop.f32.mrb[72].mxu1  ;;  %1231 = vmatprep.mubr.bf16.mxu0 %v2081_v0  ;;  %2000 = vrsqrt.f32 %v1105_v3 }
 0x3dc   : > { %v1887_v19 = vpop.f32.mrb[73].mxu1 }
 0x3dd   : > { %2002 = vrsqrt.f32 %v1106_v16  ;;  %v1888_v9 = vadd.f32 %v1887_v19, %v1886_v5  ;;  %v1889_v8 = vpop.f32.mrb[74].mxu1  ;;  %v1997_v24 = vpop.eup %1996  ;;  %v1306_v19 = vlaneseq }
 0x3de   : > { %v1890_v10 = vpop.f32.mrb[75].mxu1 }
 0x3df   : > { %v1999_v13 = vpop.eup %1998  ;;  %v1091_v15 = vmul.f32 0.0625, %v1888_v9  ;;  %v1891_v11 = vadd.f32 %v1890_v10, %v1889_v8  ;;  %v1307_v9 = vshrl.u32 %v1306_v19, 7 }
 0x3e0   : > { %v1131_v28 = vpack.c.bf16 %v1999_v13, %v1997_v24  ;;  %v1304_v24 = vld [vmem:[%s2972_s4] sm:$0x3] }
 0x3e1   : > { %v1107_v17 = vadd.f32 1e-05, %v1091_v15  ;;  %v1092_v31 = vmul.f32 0.0625, %v1891_v11  ;;  %v1308_v8 = vsub.s32 0, %v1307_v9  ;;  %v1312_v10 = vsub.s32 1, %v1307_v9 }
 0x3e2   : > { %1714 = vmatmul.mubr.msk.bf16.gmra.mrb[64].mxu0 %vm764_vm1, %v1131_v28 }
 0x3e3   : > { %v1108_v21 = vadd.f32 1e-05, %v1092_v31  ;;  %v1892_v63 = vpop.f32.mrb[76].mxu1  ;;  %1241 = vmatprep.mubr.bf16.mxu0 %v2081_v0  ;;  %2004 = vrsqrt.f32 %v1107_v17  ;;  %v2686_v13 = vrot.slane %v1304_v24, %v1308_v8  ;;  %v2688_v11 = vrot.slane %v1304_v24, %v1312_v10 }
 0x3e4   : > { %v1893_v52 = vpop.f32.mrb[77].mxu1 }
 0x3e5   : > { %2006 = vrsqrt.f32 %v1108_v21  ;;  %v1894_v35 = vadd.f32 %v1893_v52, %v1892_v63  ;;  %v1895_v25 = vpop.f32.mrb[78].mxu1  ;;  %v2001_v27 = vpop.eup %2000 }
 0x3e6   : > { %v1896_v4 = vpop.f32.mrb[79].mxu1 }
 0x3e7   : > { %v2003_v56 = vpop.eup %2002  ;;  %v1093_v29 = vmul.f32 0.0625, %v1894_v35  ;;  %v1897_v7 = vadd.f32 %v1896_v4, %v1895_v25 }
 0x3e8   : > { %v1132_v60 = vpack.c.bf16 %v2003_v56, %v2001_v27 }
 0x3e9   : > { %v1109_v33 = vadd.f32 1e-05, %v1093_v29  ;;  %v1094_v41 = vmul.f32 0.0625, %v1897_v7 }
 0x3ea   : > { %1715 = vmatmul.mubr.msk.bf16.gmra.mrb[68].mxu0 %vm764_vm1, %v1132_v60 }
 0x3eb   : > { %v1110_v12 = vadd.f32 1e-05, %v1094_v41  ;;  %1251 = vmatprep.mubr.bf16.mxu0 %v2081_v0  ;;  %2008 = vrsqrt.f32 %v1109_v33 }
 0x3ed   : > { %2010 = vrsqrt.f32 %v1110_v12  ;;  %v2005_v44 = vpop.eup %2004 }
 0x3ef   : > { %v2007_v1 = vpop.eup %2006 }
 0x3f0   : > { %v1133_v3 = vpack.c.bf16 %v2007_v1, %v2005_v44 }
 0x3f2   : > { %1716 = vmatmul.mubr.msk.bf16.gmra.mrb[72].mxu0 %vm764_vm1, %v1133_v3 }
 0x3f3   : > { %1261 = vmatprep.mubr.bf16.mxu0 %v2081_v0  ;;  %v1348_v0 = vld [vmem:[%s2973_s5] sm:$0x3] }
 0x3f4   : > { %v2691_v31 = vrot.slane %v1348_v0, %v1308_v8  ;;  %v2694_v52 = vrot.slane %v1348_v0, %v1312_v10 }
 0x3f5   : > { %v2009_v45 = vpop.eup %2008 }
 0x3f7   : > { %v2011_v16 = vpop.eup %2010 }
 0x3f8   : > { %v1134_v5 = vpack.c.bf16 %v2011_v16, %v2009_v45 }
 0x3fa   : > { %1717 = vmatmul.mubr.msk.bf16.gmra.mrb[76].mxu0 %vm764_vm1, %v1134_v5 }
 0x495   : > { %v1193_v15 = vpop.f32.mrb[48].mxu0 }
 0x496   : > { %v1272_v28 = vmul.f32 %v1193_v15, %v2504_v47  ;;  %v1195_v17 = vpop.f32.mrb[49].mxu0 }
 0x497   : > { %v1273_v21 = vmul.f32 %v1195_v17, %v2507_v50  ;;  %v1197_v63 = vpop.f32.mrb[50].mxu0 }
 0x498   : > { %v1316_v35 = vmul.f32 %v2686_v13, %v1272_v28  ;;  %v1274_v25 = vmul.f32 %v1197_v63, %v2510_v59  ;;  %v1199_v27 = vpop.f32.mrb[51].mxu0 }
 0x499   : > { %v1317_v4 = vmul.f32 %v2688_v11, %v1273_v21  ;;  %v1275_v56 = vmul.f32 %v1199_v27, %v2513_v62 }
 0x49a   : > { %v1318_v47 = vmul.f32 %v2686_v13, %v1274_v25  ;;  %v1360_v50 = vadd.f32 %v2691_v31, %v1316_v35 }
 0x49b   : > { %v1319_v59 = vmul.f32 %v2688_v11, %v1275_v56  ;;  %v1361_v29 = vadd.f32 %v2694_v52, %v1317_v4 }
 0x49c   : > { %1424 = vrot.lane.b32.xlu0 %v1360_v50, %s2082_s27  ;;  %1392 = vst.msk [vmem:[%s2703_s30] sm:$0xff] %vm349_vm0, %v1360_v50  ;;  %v1362_v62 = vadd.f32 %v2691_v31, %v1318_v47 }
 0x49d   : > { %v1203_v7 = vpop.f32.mrb[52].mxu0  ;;  %v1363_v60 = vadd.f32 %v2694_v52, %v1319_v59  ;;  %1734 = vst.msk [vmem:[%s2703_s30 + $0x20] sm:$0xff] %vm349_vm0, %v1361_v29 }
 0x49e   : > { %v1276_v33 = vmul.f32 %v1203_v7, %v2524_v18  ;;  %v1205_v41 = vpop.f32.mrb[53].mxu0  ;;  %1393 = vst.msk [vmem:[%s2703_s30 + $0x8] sm:$0xff] %vm349_vm0, %v1362_v62 }
 0x49f   : > { %v1277_v12 = vmul.f32 %v1205_v41, %v2527_v20  ;;  %1524 = vrot.lane.b32.xlu1 %v1363_v60, %s2082_s27  ;;  %1735 = vst.msk [vmem:[%s2703_s30 + $0x28] sm:$0xff] %vm349_vm0, %v1363_v60  ;;  %v1207_v44 = vpop.f32.mrb[54].mxu0 }
 0x4a0   : > { %v1320_v1 = vmul.f32 %v2686_v13, %v1276_v33  ;;  %v1278_v3 = vmul.f32 %v1207_v44, %v2530_v23  ;;  %1522 = vrot.lane.b32.xlu0 %v1361_v29, %s2082_s27  ;;  %v1209_v45 = vpop.f32.mrb[55].mxu0 }
 0x4a1   : > { %v1321_v18 = vmul.f32 %v2688_v11, %v1277_v12  ;;  %v1279_v16 = vmul.f32 %v1209_v45, %v2533_v32 }
 0x4a2   : > { %v1322_v20 = vmul.f32 %v2686_v13, %v1278_v3  ;;  %v1364_v5 = vadd.f32 %v2691_v31, %v1320_v1 }
 0x4a3   : > { %v1323_v19 = vmul.f32 %v2688_v11, %v1279_v16  ;;  %v1365_v9 = vadd.f32 %v2694_v52, %v1321_v18 }
 0x4a4   : > { %1426 = vrot.lane.b32.xlu0 %v1362_v62, %s2082_s27  ;;  %1428 = vrot.lane.b32.xlu1 %v1364_v5, %s2082_s27  ;;  %1394 = vst.msk [vmem:[%s2703_s30 + $0x40] sm:$0xff] %vm349_vm0, %v1364_v5  ;;  %v1366_v23 = vadd.f32 %v2691_v31, %v1322_v20 }
 0x4a5   : > { %v1213_v8 = vpop.f32.mrb[56].mxu0  ;;  %1736 = vst.msk [vmem:[%s2703_s30 + $0x60] sm:$0xff] %vm349_vm0, %v1365_v9  ;;  %v1367_v32 = vadd.f32 %v2694_v52, %v1323_v19 }
 0x4a6   : > { %v1280_v24 = vmul.f32 %v1213_v8, %v2544_v36  ;;  %v1215_v10 = vpop.f32.mrb[57].mxu0  ;;  %1395 = vst.msk [vmem:[%s2703_s30 + $0x48] sm:$0xff] %vm349_vm0, %v1366_v23 }
 0x4a7   : > { %v1281_v0 = vmul.f32 %v1215_v10, %v2547_v38  ;;  %v1217_v15 = vpop.f32.mrb[58].mxu0  ;;  %1737 = vst.msk [vmem:[%s2703_s30 + $0x68] sm:$0xff] %vm349_vm0, %v1367_v32 }
 0x4a8   : > { %v1324_v28 = vmul.f32 %v2686_v13, %v1280_v24  ;;  %v1282_v17 = vmul.f32 %v1217_v15, %v2550_v40  ;;  %1526 = vrot.lane.b32.xlu0 %v1365_v9, %s2082_s27  ;;  %1430 = vrot.lane.b32.xlu1 %v1366_v23, %s2082_s27  ;;  %v1219_v21 = vpop.f32.mrb[59].mxu0 }
 0x4a9   : > { %v1325_v36 = vmul.f32 %v2688_v11, %v1281_v0  ;;  %v1283_v63 = vmul.f32 %v1219_v21, %v2553_v42 }
 0x4aa   : > { %v1326_v38 = vmul.f32 %v2686_v13, %v1282_v17  ;;  %v1368_v35 = vadd.f32 %v2691_v31, %v1324_v28 }
 0x4ab   : > { %v1327_v25 = vmul.f32 %v2688_v11, %v1283_v63  ;;  %v1369_v27 = vadd.f32 %v2694_v52, %v1325_v36 }
 0x4ac   : > { %1528 = vrot.lane.b32.xlu1 %v1367_v32, %s2082_s27  ;;  %1432 = vrot.lane.b32.xlu0 %v1368_v35, %s2082_s27  ;;  %1396 = vst.msk [vmem:[%s2703_s30 + $0x80] sm:$0xff] %vm349_vm0, %v1368_v35  ;;  %v1370_v40 = vadd.f32 %v2691_v31, %v1326_v38 }
 0x4ad   : > { %v1223_v4 = vpop.f32.mrb[60].mxu0  ;;  %1738 = vst.msk [vmem:[%s2703_s30 + $0xa0] sm:$0xff] %vm349_vm0, %v1369_v27  ;;  %v1371_v42 = vadd.f32 %v2694_v52, %v1327_v25 }
 0x4ae   : > { %v1284_v56 = vmul.f32 %v1223_v4, %v2564_v46  ;;  %v1225_v47 = vpop.f32.mrb[61].mxu0  ;;  %1397 = vst.msk [vmem:[%s2703_s30 + $0x88] sm:$0xff] %vm349_vm0, %v1370_v40 }
 0x4af   : > { %v1285_v50 = vmul.f32 %v1225_v47, %v2567_v57  ;;  %v1227_v59 = vpop.f32.mrb[62].mxu0  ;;  %1739 = vst.msk [vmem:[%s2703_s30 + $0xa8] sm:$0xff] %vm349_vm0, %v1371_v42 }
 0x4b0   : > { %v1328_v29 = vmul.f32 %v2686_v13, %v1284_v56  ;;  %v1286_v62 = vmul.f32 %v1227_v59, %v2570_v6  ;;  %1530 = vrot.lane.b32.xlu0 %v1369_v27, %s2082_s27  ;;  %1434 = vrot.lane.b32.xlu1 %v1370_v40, %s2082_s27  ;;  %v1229_v7 = vpop.f32.mrb[63].mxu0 }
 0x4b1   : > { %v1329_v46 = vmul.f32 %v2688_v11, %v1285_v50  ;;  %v1287_v60 = vmul.f32 %v1229_v7, %v2573_v51 }
 0x4b2   : > { %v1330_v57 = vmul.f32 %v2686_v13, %v1286_v62  ;;  %v1372_v33 = vadd.f32 %v2691_v31, %v1328_v29 }
 0x4b3   : > { %v1331_v41 = vmul.f32 %v2688_v11, %v1287_v60  ;;  %v1373_v12 = vadd.f32 %v2694_v52, %v1329_v46 }
 0x4b4   : > { %1532 = vrot.lane.b32.xlu1 %v1371_v42, %s2082_s27  ;;  %1436 = vrot.lane.b32.xlu0 %v1372_v33, %s2082_s27  ;;  %1398 = vst.msk [vmem:[%s2703_s30 + $0xc0] sm:$0xff] %vm349_vm0, %v1372_v33  ;;  %v1374_v6 = vadd.f32 %v2691_v31, %v1330_v57 }
 0x4b5   : > { %v1233_v44 = vpop.f32.mrb[64].mxu0  ;;  %1740 = vst.msk [vmem:[%s2703_s30 + $0xe0] sm:$0xff] %vm349_vm0, %v1373_v12  ;;  %v1375_v51 = vadd.f32 %v2694_v52, %v1331_v41 }
 0x4b6   : > { %v1288_v1 = vmul.f32 %v1233_v44, %v2584_v55  ;;  %v1235_v3 = vpop.f32.mrb[65].mxu0  ;;  %1399 = vst.msk [vmem:[%s2703_s30 + $0xc8] sm:$0xff] %vm349_vm0, %v1374_v6 }
 0x4b7   : > { %v1289_v45 = vmul.f32 %v1235_v3, %v2587_v22  ;;  %v1237_v18 = vpop.f32.mrb[66].mxu0  ;;  %1741 = vst.msk [vmem:[%s2703_s30 + $0xe8] sm:$0xff] %vm349_vm0, %v1375_v51 }
 0x4b8   : > { %v1332_v16 = vmul.f32 %v2686_v13, %v1288_v1  ;;  %v1290_v20 = vmul.f32 %v1237_v18, %v2590_v34  ;;  %1534 = vrot.lane.b32.xlu0 %v1373_v12, %s2082_s27  ;;  %1438 = vrot.lane.b32.xlu1 %v1374_v6, %s2082_s27  ;;  %v1239_v5 = vpop.f32.mrb[67].mxu0 }
 0x4b9   : > { %v1333_v55 = vmul.f32 %v2688_v11, %v1289_v45  ;;  %v1291_v19 = vmul.f32 %v1239_v5, %v2593_v2 }
 0x4ba   : > { %v1334_v22 = vmul.f32 %v2686_v13, %v1290_v20  ;;  %v1376_v9 = vadd.f32 %v2691_v31, %v1332_v16 }
 0x4bb   : > { %v1335_v23 = vmul.f32 %v2688_v11, %v1291_v19  ;;  %v1377_v8 = vadd.f32 %v2694_v52, %v1333_v55 }
 0x4bc   : > { %1536 = vrot.lane.b32.xlu1 %v1375_v51, %s2082_s27  ;;  %1440 = vrot.lane.b32.xlu0 %v1376_v9, %s2082_s27  ;;  %1400 = vst.msk [vmem:[%s2703_s30 + $0x100] sm:$0xff] %vm349_vm0, %v1376_v9  ;;  %v1378_v34 = vadd.f32 %v2691_v31, %v1334_v22 }
 0x4bd   : > { %v1243_v32 = vpop.f32.mrb[68].mxu0  ;;  %1742 = vst.msk [vmem:[%s2703_s30 + $0x120] sm:$0xff] %vm349_vm0, %v1377_v8  ;;  %v1379_v2 = vadd.f32 %v2694_v52, %v1335_v23 }
 0x4be   : > { %v1292_v24 = vmul.f32 %v1243_v32, %v2604_v37  ;;  %v1245_v10 = vpop.f32.mrb[69].mxu0  ;;  %1401 = vst.msk [vmem:[%s2703_s30 + $0x108] sm:$0xff] %vm349_vm0, %v1378_v34 }
 0x4bf   : > { %v1293_v0 = vmul.f32 %v1245_v10, %v2607_v39  ;;  %v1247_v15 = vpop.f32.mrb[70].mxu0  ;;  %1743 = vst.msk [vmem:[%s2703_s30 + $0x128] sm:$0xff] %vm349_vm0, %v1379_v2 }
 0x4c0   : > { %v1336_v28 = vmul.f32 %v2686_v13, %v1292_v24  ;;  %v1294_v17 = vmul.f32 %v1247_v15, %v2610_v43  ;;  %1538 = vrot.lane.b32.xlu0 %v1377_v8, %s2082_s27  ;;  %1442 = vrot.lane.b32.xlu1 %v1378_v34, %s2082_s27  ;;  %v1249_v21 = vpop.f32.mrb[71].mxu0 }
 0x4c1   : > { %v1337_v37 = vmul.f32 %v2688_v11, %v1293_v0  ;;  %v1295_v36 = vmul.f32 %v1249_v21, %v2613_v14 }
 0x4c2   : > { %v1338_v39 = vmul.f32 %v2686_v13, %v1294_v17  ;;  %v1380_v63 = vadd.f32 %v2691_v31, %v1336_v28 }
 0x4c3   : > { %v1339_v38 = vmul.f32 %v2688_v11, %v1295_v36  ;;  %v1381_v35 = vadd.f32 %v2694_v52, %v1337_v37 }
 0x4c4   : > { %1540 = vrot.lane.b32.xlu1 %v1379_v2, %s2082_s27  ;;  %1444 = vrot.lane.b32.xlu0 %v1380_v63, %s2082_s27  ;;  %1402 = vst.msk [vmem:[%s2703_s30 + $0x140] sm:$0xff] %vm349_vm0, %v1380_v63  ;;  %v1382_v43 = vadd.f32 %v2691_v31, %v1338_v39 }
 0x4c5   : > { %v1253_v25 = vpop.f32.mrb[72].mxu0  ;;  %1744 = vst.msk [vmem:[%s2703_s30 + $0x160] sm:$0xff] %vm349_vm0, %v1381_v35  ;;  %v1383_v14 = vadd.f32 %v2694_v52, %v1339_v38 }
 0x4c6   : > { %v1296_v27 = vmul.f32 %v1253_v25, %v2624_v48  ;;  %v1255_v40 = vpop.f32.mrb[73].mxu0  ;;  %1403 = vst.msk [vmem:[%s2703_s30 + $0x148] sm:$0xff] %vm349_vm0, %v1382_v43 }
 0x4c7   : > { %v1297_v4 = vmul.f32 %v1255_v40, %v2627_v61  ;;  %v1257_v42 = vpop.f32.mrb[74].mxu0  ;;  %1745 = vst.msk [vmem:[%s2703_s30 + $0x168] sm:$0xff] %vm349_vm0, %v1383_v14 }
 0x4c8   : > { %v1340_v56 = vmul.f32 %v2686_v13, %v1296_v27  ;;  %v1298_v47 = vmul.f32 %v1257_v42, %v2630_v53  ;;  %1542 = vrot.lane.b32.xlu0 %v1381_v35, %s2082_s27  ;;  %1446 = vrot.lane.b32.xlu1 %v1382_v43, %s2082_s27  ;;  %v1259_v50 = vpop.f32.mrb[75].mxu0 }
 0x4c9   : > { %v1341_v48 = vmul.f32 %v2688_v11, %v1297_v4  ;;  %v1299_v59 = vmul.f32 %v1259_v50, %v2633_v26 }
 0x4ca   : > { %v1342_v61 = vmul.f32 %v2686_v13, %v1298_v47  ;;  %v1384_v29 = vadd.f32 %v2691_v31, %v1340_v56 }
 0x4cb   : > { %v1343_v62 = vmul.f32 %v2688_v11, %v1299_v59  ;;  %v1385_v7 = vadd.f32 %v2694_v52, %v1341_v48 }
 0x4cc   : > { %1544 = vrot.lane.b32.xlu1 %v1383_v14, %s2082_s27  ;;  %1448 = vrot.lane.b32.xlu0 %v1384_v29, %s2082_s27  ;;  %1404 = vst.msk [vmem:[%s2703_s30 + $0x180] sm:$0xff] %vm349_vm0, %v1384_v29  ;;  %v1386_v53 = vadd.f32 %v2691_v31, %v1342_v61 }
 0x4cd   : > { %v1263_v46 = vpop.f32.mrb[76].mxu0  ;;  %1746 = vst.msk [vmem:[%s2703_s30 + $0x1a0] sm:$0xff] %vm349_vm0, %v1385_v7  ;;  %v1387_v26 = vadd.f32 %v2694_v52, %v1343_v62 }
 0x4ce   : > { %v1300_v60 = vmul.f32 %v1263_v46, %v2644_v58  ;;  %v1265_v57 = vpop.f32.mrb[77].mxu0  ;;  %1405 = vst.msk [vmem:[%s2703_s30 + $0x188] sm:$0xff] %vm349_vm0, %v1386_v53 }
 0x4cf   : > { %v1301_v33 = vmul.f32 %v1265_v57, %v2647_v30  ;;  %v1267_v41 = vpop.f32.mrb[78].mxu0  ;;  %1747 = vst.msk [vmem:[%s2703_s30 + $0x1a8] sm:$0xff] %vm349_vm0, %v1387_v26 }
 0x4d0   : > { %v1344_v12 = vmul.f32 %v2686_v13, %v1300_v60  ;;  %v1302_v6 = vmul.f32 %v1267_v41, %v2650_v49  ;;  %1546 = vrot.lane.b32.xlu0 %v1385_v7, %s2082_s27  ;;  %1450 = vrot.lane.b32.xlu1 %v1386_v53, %s2082_s27  ;;  %v1269_v58 = vpop.f32.mrb[79].mxu0 }
 0x4d1   : > { %v1345_v44 = vmul.f32 %v2688_v11, %v1301_v33  ;;  %v1303_v30 = vmul.f32 %v1269_v58, %v2653_v54 }
 0x4d2   : > { %v1346_v51 = vmul.f32 %v2686_v13, %v1302_v6  ;;  %v1388_v1 = vadd.f32 %v2691_v31, %v1344_v12 }
 0x4d3   : > { %v1347_v3 = vmul.f32 %v2688_v11, %v1303_v30  ;;  %v1389_v49 = vadd.f32 %v2694_v52, %v1345_v44 }
 0x4d4   : > { %1548 = vrot.lane.b32.xlu1 %v1387_v26, %s2082_s27  ;;  %1452 = vrot.lane.b32.xlu0 %v1388_v1, %s2082_s27  ;;  %1406 = vst.msk [vmem:[%s2703_s30 + $0x1c0] sm:$0xff] %vm349_vm0, %v1388_v1  ;;  %v1390_v45 = vadd.f32 %v2691_v31, %v1346_v51 }
 0x4d5   : > { %1748 = vst.msk [vmem:[%s2703_s30 + $0x1e0] sm:$0xff] %vm349_vm0, %v1389_v49  ;;  %v1391_v54 = vadd.f32 %v2694_v52, %v1347_v3 }
 0x4d6   : > { %1407 = vst.msk [vmem:[%s2703_s30 + $0x1c8] sm:$0xff] %vm349_vm0, %v1390_v45 }
 0x4d7   : > { %1749 = vst.msk [vmem:[%s2703_s30 + $0x1e8] sm:$0xff] %vm349_vm0, %v1391_v54 }
 0x4d8   : > { %1550 = vrot.lane.b32.xlu0 %v1389_v49, %s2082_s27  ;;  %1454 = vrot.lane.b32.xlu1 %v1390_v45, %s2082_s27 }
 0x4dc   : > { %1552 = vrot.lane.b32.xlu1 %v1391_v54, %s2082_s27 }
 0x50e   : > { %v1425_v13 = vpop.permute.xlu0 %1424 }
 0x50f   : > { %1718 = vst.msk [vmem:[%s2703_s30 + $0x10] sm:$0xff] %vm349_vm0, %v1425_v13 }
 0x511   : > { %v1525_v11 = vpop.permute.xlu1 %1524 }
 0x512   : > { %1751 = vst.msk [vmem:[%s2703_s30 + $0x38] sm:$0xff] %vm349_vm0, %v1525_v11  ;;  %v1523_v31 = vpop.permute.xlu0 %1522 }
 0x513   : > { %1750 = vst.msk [vmem:[%s2703_s30 + $0x30] sm:$0xff] %vm349_vm0, %v1523_v31 }
 0x516   : > { %v1427_v52 = vpop.permute.xlu0 %1426  ;;  %v1429_v18 = vpop.permute.xlu1 %1428 }
 0x517   : > { %1719 = vst.msk [vmem:[%s2703_s30 + $0x18] sm:$0xff] %vm349_vm0, %v1427_v52  ;;  %1720 = vst.msk [vmem:[%s2703_s30 + $0x50] sm:$0xff] %vm349_vm0, %v1429_v18 }
 0x51a   : > { %v1527_v16 = vpop.permute.xlu0 %1526  ;;  %v1431_v20 = vpop.permute.xlu1 %1430 }
 0x51b   : > { %1752 = vst.msk [vmem:[%s2703_s30 + $0x70] sm:$0xff] %vm349_vm0, %v1527_v16  ;;  %1721 = vst.msk [vmem:[%s2703_s30 + $0x58] sm:$0xff] %vm349_vm0, %v1431_v20 }
 0x51e   : > { %v1529_v5 = vpop.permute.xlu1 %1528  ;;  %v1433_v55 = vpop.permute.xlu0 %1432 }
 0x51f   : > { %1753 = vst.msk [vmem:[%s2703_s30 + $0x78] sm:$0xff] %vm349_vm0, %v1529_v5  ;;  %1722 = vst.msk [vmem:[%s2703_s30 + $0x90] sm:$0xff] %vm349_vm0, %v1433_v55 }
 0x522   : > { %v1531_v19 = vpop.permute.xlu0 %1530  ;;  %v1435_v22 = vpop.permute.xlu1 %1434 }
 0x523   : > { %1754 = vst.msk [vmem:[%s2703_s30 + $0xb0] sm:$0xff] %vm349_vm0, %v1531_v19  ;;  %1723 = vst.msk [vmem:[%s2703_s30 + $0x98] sm:$0xff] %vm349_vm0, %v1435_v22 }
 0x526   : > { %v1533_v9 = vpop.permute.xlu1 %1532  ;;  %v1437_v23 = vpop.permute.xlu0 %1436 }
 0x527   : > { %1755 = vst.msk [vmem:[%s2703_s30 + $0xb8] sm:$0xff] %vm349_vm0, %v1533_v9  ;;  %1724 = vst.msk [vmem:[%s2703_s30 + $0xd0] sm:$0xff] %vm349_vm0, %v1437_v23 }
 0x52a   : > { %v1535_v8 = vpop.permute.xlu0 %1534  ;;  %v1439_v34 = vpop.permute.xlu1 %1438 }
 0x52b   : > { %1756 = vst.msk [vmem:[%s2703_s30 + $0xf0] sm:$0xff] %vm349_vm0, %v1535_v8  ;;  %1725 = vst.msk [vmem:[%s2703_s30 + $0xd8] sm:$0xff] %vm349_vm0, %v1439_v34 }
 0x52e   : > { %v1537_v32 = vpop.permute.xlu1 %1536  ;;  %v1441_v2 = vpop.permute.xlu0 %1440 }
 0x52f   : > { %1757 = vst.msk [vmem:[%s2703_s30 + $0xf8] sm:$0xff] %vm349_vm0, %v1537_v32  ;;  %1726 = vst.msk [vmem:[%s2703_s30 + $0x110] sm:$0xff] %vm349_vm0, %v1441_v2 }
 0x532   : > { %v1539_v24 = vpop.permute.xlu0 %1538  ;;  %v1443_v10 = vpop.permute.xlu1 %1442 }
 0x533   : > { %1758 = vst.msk [vmem:[%s2703_s30 + $0x130] sm:$0xff] %vm349_vm0, %v1539_v24  ;;  %1727 = vst.msk [vmem:[%s2703_s30 + $0x118] sm:$0xff] %vm349_vm0, %v1443_v10 }
 0x536   : > { %v1541_v0 = vpop.permute.xlu1 %1540  ;;  %v1445_v15 = vpop.permute.xlu0 %1444 }
 0x537   : > { %1759 = vst.msk [vmem:[%s2703_s30 + $0x138] sm:$0xff] %vm349_vm0, %v1541_v0  ;;  %1728 = vst.msk [vmem:[%s2703_s30 + $0x150] sm:$0xff] %vm349_vm0, %v1445_v15 }
 0x53a   : > { %v1543_v28 = vpop.permute.xlu0 %1542  ;;  %v1447_v17 = vpop.permute.xlu1 %1446 }
 0x53b   : > { %1760 = vst.msk [vmem:[%s2703_s30 + $0x170] sm:$0xff] %vm349_vm0, %v1543_v28  ;;  %1729 = vst.msk [vmem:[%s2703_s30 + $0x158] sm:$0xff] %vm349_vm0, %v1447_v17 }
 0x53e   : > { %v1545_v21 = vpop.permute.xlu1 %1544  ;;  %v1449_v37 = vpop.permute.xlu0 %1448 }
 0x53f   : > { %1761 = vst.msk [vmem:[%s2703_s30 + $0x178] sm:$0xff] %vm349_vm0, %v1545_v21  ;;  %1730 = vst.msk [vmem:[%s2703_s30 + $0x190] sm:$0xff] %vm349_vm0, %v1449_v37 }
 0x542   : > { %v1547_v36 = vpop.permute.xlu0 %1546  ;;  %v1451_v39 = vpop.permute.xlu1 %1450 }
 0x543   : > { %1762 = vst.msk [vmem:[%s2703_s30 + $0x1b0] sm:$0xff] %vm349_vm0, %v1547_v36  ;;  %1731 = vst.msk [vmem:[%s2703_s30 + $0x198] sm:$0xff] %vm349_vm0, %v1451_v39 }
 0x546   : > { %v1549_v63 = vpop.permute.xlu1 %1548  ;;  %v1453_v38 = vpop.permute.xlu0 %1452 }
 0x547   : > { %1763 = vst.msk [vmem:[%s2703_s30 + $0x1b8] sm:$0xff] %vm349_vm0, %v1549_v63  ;;  %1732 = vst.msk [vmem:[%s2703_s30 + $0x1d0] sm:$0xff] %vm349_vm0, %v1453_v38 }
 0x54a   : > { %v1551_v35 = vpop.permute.xlu0 %1550  ;;  %v1455_v43 = vpop.permute.xlu1 %1454 }
 0x54b   : > { %1764 = vst.msk [vmem:[%s2703_s30 + $0x1f0] sm:$0xff] %vm349_vm0, %v1551_v35  ;;  %1733 = vst.msk [vmem:[%s2703_s30 + $0x1d8] sm:$0xff] %vm349_vm0, %v1455_v43 }
 0x54e   : > { %v1553_v25 = vpop.permute.xlu1 %1552 }
 0x54f   : > { %1765 = vst.msk [vmem:[%s2703_s30 + $0x1f8] sm:$0xff] %vm349_vm0, %v1553_v25 }
 0x550 PF: > { %p16_p8 = scmp.ge.s32.totalorder %s2138_s26, 6   ;;  %s2978_s21 = smov %s2068_s22 }
 0x551   : > { %s2979_s22 = smov %s2072_s23  ;;  %s2980_s23 = smov %s2148_s29 }
 0x552   : > { %s2981_s24 = smov %s2138_s26  ;;  %18 = sbr.rel (!%p16_p8) target bundleno = 3 (0x3), region = 87 }
 0x559   :  { %1611 = vsyncpa [#allocation3], 1 }
 0x55a   :  { %1613 = vsyncpa [#allocation3 + $0x1], 1 }

</bundles_post_ra>
